<compile_context>
chip_gen: v7x
topology: tpu7x:2x2x1
jax: 0.10.0
libtpu: 0.0.40
codegen_flags: <defaults>
</compile_context>

<pallas_src>
import functools

import jax
import jax.numpy as jnp
from jax import lax
from jax.experimental import pallas as pl
from jax.experimental.pallas import tpu as pltpu

DIM = 32            # model dim
NUM_HEADS = 4
HEAD_DIM = DIM // NUM_HEADS
EXPAND = 4          # FF expansion
FF_DIM = EXPAND * DIM
EPS = 1e-5          # LayerNorm eps (PyTorch default)

# Lane offsets of the eight (DIM, DIM) projection weights inside the (32, 256)
# lane-major weight slab (and of the matching biases in vecs row 0).
L_Q1, L_K1, L_V1, L_O1, L_Q2, L_K2, L_V2, L_O2 = (i * DIM for i in range(8))

# Row indices inside the (16, 256) f32 bias / LayerNorm slab.
(ROW_BPROJ, ROW_F1B, ROW_N0G, ROW_N0B, ROW_ANG, ROW_ANB,
 ROW_FNG, ROW_FNB, ROW_F2B) = range(9)
VEC_ROWS = 16
VEC_LANES = 8 * DIM          # 256


def _erf(x):
    # Abramowitz & Stegun 7.1.26 rational approximation (|err| < 1.5e-7).
    # NOTE(perf): jax.nn.gelu(approximate=True) (tanh -> EUP) would trade ~1e-3
    # of fidelity vs torch.nn.GELU() for ~10 fewer VALU ops/element; kept exact
    # here since the narrow matmuls leave VALU slack at these widths.
    a1, a2, a3, a4, a5 = (0.254829592, -0.284496736, 1.421413741,
                          -1.453152027, 1.061405429)
    p = 0.3275911
    s = jnp.where(x >= 0.0, 1.0, -1.0)
    ax = jnp.abs(x)
    t = 1.0 / (1.0 + p * ax)
    poly = ((((a5 * t + a4) * t + a3) * t + a2) * t + a1) * t
    return s * (1.0 - poly * jnp.exp(-ax * ax))


def _gelu(x):
    # exact (erf-based) GELU, matching torch.nn.GELU() default
    return 0.5 * x * (1.0 + _erf(x * 0.7071067811865476))


def _decoder_block_kernel(fold_batches, mm_dtype, *refs):
    """Whole DecoderBlock forward for one batch tile; heads & batches fused."""
    if fold_batches:
        (x_ref, kin_ref, vin_ref, wp_ref, wf1_ref, wf2_ref, vec_ref,
         hm1_ref, hm2_ref, bm1_ref, bm2_ref, out_ref) = refs
    else:
        (x_ref, kin_ref, vin_ref, wp_ref, wf1_ref, wf2_ref, vec_ref,
         hm1_ref, hm2_ref, out_ref) = refs
        bm1_ref = bm2_ref = None

    def mm(a, b):                     # MXU: cast operands, accumulate in f32
        return jnp.dot(a.astype(mm_dtype), b.astype(mm_dtype),
                       preferred_element_type=jnp.float32)

    def vrow(r, lo=0, width=DIM):     # (1, width) f32 bias / LayerNorm row
        return vec_ref[r:r + 1, lo:lo + width]

    def layernorm(t, g_row, b_row):
        mu = jnp.mean(t, axis=-1, keepdims=True)
        var = jnp.mean((t - mu) ** 2, axis=-1, keepdims=True)
        return (t - mu) * lax.rsqrt(var + EPS) * vrow(g_row) + vrow(b_row)

    def attention(q, k, v, hm, bm, o_lane):
        # Sublane-replicate K/V across heads and mask with the precomputed 0/1
        # head mask so row-block h only carries head-h features.
        k_exp = jnp.concatenate([k] * NUM_HEADS, axis=0) * hm      # (H*tk, DIM)
        v_exp = jnp.concatenate([v] * NUM_HEADS, axis=0) * hm      # (H*tk, DIM)
        # One matmul gives every head's scores: e[i, h*tk+j] = <q_i, k_j>_head h.
        # TODO(synk): per review, if the bundle shows an XLU transpose of k_exp
        # for this A@B^T form, pre-transpose the 4x smaller k instead.
        e = lax.dot_general(q.astype(mm_dtype), k_exp.astype(mm_dtype),
                            (((1,), (1,)), ((), ())),
                            preferred_element_type=jnp.float32)    # (tq, H*tk)
        if bm is not None:            # cross-batch kill mask (only when folding)
            e = e + bm
        m = jnp.max(e, axis=-1, keepdims=True)   # one shift is valid for all heads
        p = jnp.exp(e - m)
        num = mm(p, v_exp)            # (tq, DIM), already head-interleaved
        den = mm(p, hm)               # per-head sums broadcast over each head's lanes
        r = pl.reciprocal(jnp.maximum(den, 1e-30), approx=True)    # EUP
        r = r * (2.0 - den * r)                                    # one Newton step
        out = mm(num * r, wp_ref[:, o_lane:o_lane + DIM])
        return out + vrow(ROW_BPROJ, o_lane)

    x = x_ref[...]                    # (tq, DIM) f32
    k_in = kin_ref[...]               # (tk2, DIM)
    v_in = vin_ref[...]
    hm1 = hm1_ref[...]                # (H*tk1, DIM) 0/1 f32
    hm2 = hm2_ref[...]                # (H*tk2, DIM)
    bm1 = bm1_ref[...] if fold_batches else None
    bm2 = bm2_ref[...] if fold_batches else None

    # ---- self-attention (fused QKV projection; softmax scale folded into Wq) ----
    qkv = mm(x, wp_ref[:, L_Q1:L_V1 + DIM]) + vrow(ROW_BPROJ, L_Q1, 3 * DIM)
    attn1 = attention(qkv[:, 0:DIM], qkv[:, DIM:2 * DIM], qkv[:, 2 * DIM:3 * DIM],
                      hm1, bm1, L_O1)
    query = layernorm(attn1 + x, ROW_N0G, ROW_N0B)     # dropout == identity (eval)

    # ---- cross-attention (key/value are independent inputs -> separate K/V mms) ----
    q2 = mm(query, wp_ref[:, L_Q2:L_Q2 + DIM]) + vrow(ROW_BPROJ, L_Q2)
    k2 = mm(k_in, wp_ref[:, L_K2:L_K2 + DIM]) + vrow(ROW_BPROJ, L_K2)
    v2 = mm(v_in, wp_ref[:, L_V2:L_V2 + DIM]) + vrow(ROW_BPROJ, L_V2)
    attn2 = attention(q2, k2, v2, hm2, bm2, L_O2)
    h1 = layernorm(query + attn2, ROW_ANG, ROW_ANB)

    # ---- feed-forward: Linear(32->128) -> GELU -> Linear(128->32) ----
    ff = mm(h1, wf1_ref[...]) + vrow(ROW_F1B, 0, FF_DIM)
    ff = _gelu(ff)
    ff = mm(ff, wf2_ref[...]) + vrow(ROW_F2B)   # (128,32) RHS: 128-deep contraction
    out = layernorm(h1 + ff, ROW_FNG, ROW_FNB)

    # TODO(synk): D=32 output block -> masked vst; repack lane-dense at scale if
    # the store slot ever binds (biggest single lever on v5e per review).
    out_ref[...] = out.astype(out_ref.dtype)


def _pack_params(params, mm_dtype):
    """Slab the 26 PyTorch-style parameter tensors into four TPU-friendly arrays."""
    (n0g, n0b, q1w, q1b, k1w, k1b, v1w, v1b, o1w, o1b,
     q2w, q2b, k2w, k2b, v2w, v2b, o2w, o2b,
     ang, anb, f1w, f1b, f2w, f2b, fng, fnb) = params
    scale = 1.0 / (float(DIM) ** 0.5)          # fold softmax scale into Q projections
    # Lane-major (32, 256) projection slab: [Wq1|Wk1|Wv1|Wo1|Wq2|Wk2|Wv2|Wo2].
    w_proj = jnp.concatenate(
        [q1w * scale, k1w, v1w, o1w, q2w * scale, k2w, v2w, o2w], axis=1
    ).astype(mm_dtype)
    w_ff1 = f1w.astype(mm_dtype)               # (32, 128)
    w_ff2 = f2w.astype(mm_dtype)               # (128, 32) untransposed (K,N) RHS

    def row(v):
        v = v.reshape(1, -1).astype(jnp.float32)
        return jnp.pad(v, ((0, 0), (0, VEC_LANES - v.shape[1])))

    b_proj = jnp.concatenate(
        [q1b * scale, k1b, v1b, o1b, q2b * scale, k2b, v2b, o2b], axis=1)  # (1, 256)
    rows = [row(b_proj), row(f1b), row(n0g), row(n0b), row(ang), row(anb),
            row(fng), row(fnb), row(f2b)]
    vecs = jnp.concatenate(
        rows + [jnp.zeros((VEC_ROWS - len(rows), VEC_LANES), jnp.float32)], axis=0)
    return w_proj, w_ff1, w_ff2, vecs


def _head_mask(tk):
    # (H*tk, DIM) 0/1 mask: row-block h keeps only head-h feature lanes.
    row_head = jnp.arange(NUM_HEADS * tk) // tk
    lane_head = jnp.arange(DIM) // HEAD_DIM
    return (row_head[:, None] == lane_head[None, :]).astype(jnp.float32)


def _batch_mask(b, sq, skv):
    # Additive (b*sq, H*b*skv) mask: 0 for same-batch (query, key), -1e30 otherwise.
    tk = b * skv
    qb = jnp.arange(b * sq)[:, None] // sq
    kb = (jnp.arange(NUM_HEADS * tk)[None, :] % tk) // skv
    return jnp.where(qb == kb, 0.0, -1e30).astype(jnp.float32)


def _choose_batch_block(n, sq, skv):
    # Perf review: never fold the whole batch.  The fused score matrix is
    # (b*sq, H*b*skv) -> compute & VMEM grow as b^2 while useful work grows as
    # b.  Cap the tile at ~256 rows and keep >= 2 grid steps (auto-pipelining
    # overlap + v7x 2-TensorCore sharding of the "parallel" axis).
    target_rows = 256
    best = None
    for b in range(1, n + 1):
        if n % b:
            continue
        if b > 1 and n // b < 2:
            continue
        if b > 1 and b * max(sq, skv) > target_rows:
            continue
        if (b * sq) % 8 or (b * skv) % 8:
            continue
        best = b
    if best is None:
        best = n            # single step: blocks == full arrays, no alignment needed
    return best


def _vmem_estimate(tq, tk1, tk2, fold, mm_itemsize):
    # Rough scoped-VMEM budget: double-buffered activation tiles + weight slabs
    # + mask inputs + the in-kernel e/p/expansion temporaries (NOT counted by
    # BlockSpec accounting, per review).
    f32 = 4
    act = 2 * (2 * tq + 2 * tk2) * DIM * f32
    weights = (DIM * VEC_LANES + DIM * FF_DIM + FF_DIM * DIM) * mm_itemsize \
        + VEC_ROWS * VEC_LANES * f32
    masks = NUM_HEADS * (tk1 + tk2) * DIM * f32
    if fold:
        masks += tq * NUM_HEADS * (tk1 + tk2) * f32
    tkm = max(tk1, tk2)
    temps = (2 * tq * NUM_HEADS * tkm          # e, p
             + 2 * NUM_HEADS * tkm * DIM       # k_exp, v_exp
             + 2 * tq * FF_DIM                 # FF activations
             + 6 * tq * DIM) * f32             # q/k/v/attn/residual temporaries
    return act + weights + masks + temps


def decoder_block_forward(x, key, value, params, *, batch_block=None,
                          mm_dtype=jnp.float32):
    N, Sq, D = x.shape
    Skv = key.shape[1]
    assert D == DIM and value.shape == key.shape
    b = _choose_batch_block(N, Sq, Skv) if batch_block is None else batch_block
    assert N % b == 0
    n_steps = N // b
    tq, tk1, tk2 = b * Sq, b * Sq, b * Skv
    if n_steps > 1:
        assert tq % 8 == 0 and tk2 % 8 == 0, "batch-tile rows must be sublane aligned"
    fold = b > 1

    w_proj, w_ff1, w_ff2, vecs = _pack_params(params, mm_dtype)
    hm1 = _head_mask(tk1)
    hm2 = _head_mask(tk2)

    x2 = x.reshape(N * Sq, D).astype(jnp.float32)
    k2 = key.reshape(N * Skv, D).astype(jnp.float32)
    v2 = value.reshape(N * Skv, D).astype(jnp.float32)

    inputs = [x2, k2, v2, w_proj, w_ff1, w_ff2, vecs, hm1, hm2]
    in_specs = [pl.BlockSpec((tq, D), lambda i: (i, 0)),
                pl.BlockSpec((tk2, D), lambda i: (i, 0)),
                pl.BlockSpec((tk2, D), lambda i: (i, 0))]
    # Parameter slabs / masks: full-array blocks with a constant index_map -> the
    # pipeline DMAs them once and keeps them resident across grid steps.
    in_specs += [pl.BlockSpec(a.shape, lambda i: (0, 0)) for a in inputs[3:]]
    if fold:
        bm1 = _batch_mask(b, Sq, Sq)
        bm2 = _batch_mask(b, Sq, Skv)
        inputs += [bm1, bm2]
        in_specs += [pl.BlockSpec(bm1.shape, lambda i: (0, 0)),
                     pl.BlockSpec(bm2.shape, lambda i: (0, 0))]

    est = _vmem_estimate(tq, tk1, tk2, fold, jnp.dtype(mm_dtype).itemsize)
    vmem_limit = None
    if est > 12 * 1024 * 1024:      # may exceed the default scoped-VMEM limit
        vmem_limit = int(min(max(2 * est, 32 * 1024 * 1024), 64 * 1024 * 1024))

    grid_spec = pltpu.PrefetchScalarGridSpec(
        num_scalar_prefetch=0,
        grid=(n_steps,),
        in_specs=in_specs,
        out_specs=pl.BlockSpec((tq, D), lambda i: (i, 0)),
    )
    out = pl.pallas_call(
        functools.partial(_decoder_block_kernel, fold, mm_dtype),
        out_shape=jax.ShapeDtypeStruct((N * Sq, D), jnp.float32),
        grid_spec=grid_spec,
        # Batch tiles are fully independent -> "parallel" lets v7x's two
        # TensorCores split the >=2-step grid; free on v5e/v6e.
        compiler_params=pltpu.CompilerParams(
            dimension_semantics=("parallel",),
            vmem_limit_bytes=vmem_limit),
    )(*inputs)
    return out.reshape(N, Sq, D)


def init_params(rng):
    ks = jax.random.split(rng, 10)

    def linear_params(k, din, dout):
        kw, kb = jax.random.split(k)
        bound = 1.0 / (din ** 0.5)
        w = jax.random.uniform(kw, (din, dout), jnp.float32, -bound, bound)
        b = jax.random.uniform(kb, (1, dout), jnp.float32, -bound, bound)
        return w, b

    ones = jnp.ones((1, DIM), jnp.float32)     # LayerNorm gamma (PyTorch init)
    zeros = jnp.zeros((1, DIM), jnp.float32)   # LayerNorm beta

    q1w, q1b = linear_params(ks[0], DIM, DIM)
    k1w, k1b = linear_params(ks[1], DIM, DIM)
    v1w, v1b = linear_params(ks[2], DIM, DIM)
    o1w, o1b = linear_params(ks[3], DIM, DIM)
    q2w, q2b = linear_params(ks[4], DIM, DIM)
    k2w, k2b = linear_params(ks[5], DIM, DIM)
    v2w, v2b = linear_params(ks[6], DIM, DIM)
    o2w, o2b = linear_params(ks[7], DIM, DIM)
    f1w, f1b = linear_params(ks[8], DIM, FF_DIM)
    f2w, f2b = linear_params(ks[9], FF_DIM, DIM)

    return (ones, zeros,
            q1w, q1b, k1w, k1b, v1w, v1b, o1w, o1b,
            q2w, q2b, k2w, k2b, v2w, v2b, o2w, o2b,
            ones, zeros,
            f1w, f1b, f2w, f2b,
            ones, zeros)


def ref_forward(x, key, value, params):
    """Pure-JAX reference mirroring the PyTorch forward (eval mode, no masks)."""
    (n0g, n0b,
     q1w, q1b, k1w, k1b, v1w, v1b, o1w, o1b,
     q2w, q2b, k2w, k2b, v2w, v2b, o2w, o2b,
     ang, anb,
     f1w, f1b, f2w, f2b,
     fng, fnb) = params
    scale = 1.0 / jnp.sqrt(jnp.float32(DIM))

    def lin(t, w, b):
        return t @ w + b

    def ln(t, g, b):
        mu = t.mean(-1, keepdims=True)
        var = ((t - mu) ** 2).mean(-1, keepdims=True)
        return (t - mu) / jnp.sqrt(var + EPS) * g + b

    def mha(q, k, v, wq, bq, wk, bk, wv, bv, wo, bo):
        N, Lq, _ = q.shape
        Lk = k.shape[1]
        q = lin(q, wq, bq).reshape(N, Lq, NUM_HEADS, HEAD_DIM)
        k = lin(k, wk, bk).reshape(N, Lk, NUM_HEADS, HEAD_DIM)
        v = lin(v, wv, bv).reshape(N, Lk, NUM_HEADS, HEAD_DIM)
        e = jnp.einsum('nqhd,nkhd->nhqk', q, k) * scale
        a = jax.nn.softmax(e, axis=-1)
        o = jnp.einsum('nhqk,nkhd->nqhd', a, v).reshape(N, Lq, DIM)
        return lin(o, wo, bo)

    attn = mha(x, x, x, q1w, q1b, k1w, k1b, v1w, v1b, o1w, o1b)
    query = ln(attn + x, n0g, n0b)
    attn2 = mha(query, key, value, q2w, q2b, k2w, k2b, v2w, v2b, o2w, o2b)
    h1 = ln(query + attn2, ang, anb)
    ff = lin(h1, f1w, f1b)
    ff = jax.nn.gelu(ff, approximate=False)
    ff = lin(ff, f2w, f2b)
    return ln(h1 + ff, fng, fnb)


if __name__ == "__main__":
    rng = jax.random.PRNGKey(0)
    k_params, k_x, k_k, k_v = jax.random.split(rng, 4)
    params = init_params(k_params)

    # Small shapes consistent with the module.
    N, Sq, Skv = 2, 8, 8
    x = jax.random.normal(k_x, (N, Sq, DIM), jnp.float32)
    key = jax.random.normal(k_k, (N, Skv, DIM), jnp.float32)
    value = jax.random.normal(k_v, (N, Skv, DIM), jnp.float32)
    ref = ref_forward(x, key, value, params)

    # 1) f32 MXU operands (default): tight check vs the PyTorch-style reference.
    out = jax.block_until_ready(decoder_block_forward(x, key, value, params))
    assert out.shape == (N, Sq, DIM)
    err = float(jnp.max(jnp.abs(out - ref)))
    assert err < 2e-3, f"f32 kernel mismatch vs reference: {err}"

    # 2) bf16 MXU operands (review item for v6e/v7x); elementwise math stays f32.
    out_bf16 = jax.block_until_ready(
        decoder_block_forward(x, key, value, params, mm_dtype=jnp.bfloat16))
    err_bf16 = float(jnp.max(jnp.abs(out_bf16 - ref)))
    assert err_bf16 < 1e-1, f"bf16 kernel mismatch vs reference: {err_bf16}"

    # 3) multi-batch tile: exercises the fused cross-batch mask path (2 batches
    #    per tile, 2 grid steps).
    ks2 = jax.random.split(jax.random.PRNGKey(1), 3)
    N2 = 4
    x4 = jax.random.normal(ks2[0], (N2, Sq, DIM), jnp.float32)
    key4 = jax.random.normal(ks2[1], (N2, Skv, DIM), jnp.float32)
    value4 = jax.random.normal(ks2[2], (N2, Skv, DIM), jnp.float32)
    out4 = jax.block_until_ready(
        decoder_block_forward(x4, key4, value4, params, batch_block=2))
    err4 = float(jnp.max(jnp.abs(out4 - ref_forward(x4, key4, value4, params))))
    assert err4 < 2e-3, f"batch-folded kernel mismatch vs reference: {err4}"

    print("KERNEL_OK")
</pallas_src>

<mosaic_0001>
module attributes {stable_mosaic.version = 11 : i64} {
  func.func @_decoder_block_kernel(%arg0: i32, %arg1: memref<8x32xf32, #tpu.memory_space<vmem>>, %arg2: memref<8x32xf32, #tpu.memory_space<vmem>>, %arg3: memref<8x32xf32, #tpu.memory_space<vmem>>, %arg4: memref<32x256xf32, #tpu.memory_space<vmem>>, %arg5: memref<32x128xf32, #tpu.memory_space<vmem>>, %arg6: memref<128x32xf32, #tpu.memory_space<vmem>>, %arg7: memref<16x256xf32, #tpu.memory_space<vmem>>, %arg8: memref<32x32xf32, #tpu.memory_space<vmem>>, %arg9: memref<32x32xf32, #tpu.memory_space<vmem>>, %arg10: memref<8x32xf32, #tpu.memory_space<vmem>>) attributes {dimension_semantics = [#tpu.dimension_semantics<parallel>], iteration_bounds = array<i64: 2>, scalar_prefetch = 0 : i64, scratch_operands = 0 : i64, tpu.core_type = #tpu.core_type<tc>, window_params = [{transform_indices = @transform_0, window_bounds = array<i64: 8, 32>}, {transform_indices = @transform_1, window_bounds = array<i64: 8, 32>}, {transform_indices = @transform_2, window_bounds = array<i64: 8, 32>}, {pipeline_mode = #tpu.pipeline_mode<synchronous>, transform_indices = @transform_3, window_bounds = array<i64: 32, 256>}, {pipeline_mode = #tpu.pipeline_mode<synchronous>, transform_indices = @transform_4, window_bounds = array<i64: 32, 128>}, {pipeline_mode = #tpu.pipeline_mode<synchronous>, transform_indices = @transform_5, window_bounds = array<i64: 128, 32>}, {pipeline_mode = #tpu.pipeline_mode<synchronous>, transform_indices = @transform_6, window_bounds = array<i64: 16, 256>}, {pipeline_mode = #tpu.pipeline_mode<synchronous>, transform_indices = @transform_7, window_bounds = array<i64: 32, 32>}, {pipeline_mode = #tpu.pipeline_mode<synchronous>, transform_indices = @transform_8, window_bounds = array<i64: 32, 32>}, {transform_indices = @transform_9, window_bounds = array<i64: 8, 32>}]} {
    %c0 = arith.constant 0 : index
    %c0_0 = arith.constant 0 : index
    %0 = vector.load %arg1[%c0, %c0_0] : memref<8x32xf32, #tpu.memory_space<vmem>>, vector<8x32xf32>
    %c0_1 = arith.constant 0 : index
    %c0_2 = arith.constant 0 : index
    %1 = vector.load %arg2[%c0_1, %c0_2] : memref<8x32xf32, #tpu.memory_space<vmem>>, vector<8x32xf32>
    %c0_3 = arith.constant 0 : index
    %c0_4 = arith.constant 0 : index
    %2 = vector.load %arg3[%c0_3, %c0_4] : memref<8x32xf32, #tpu.memory_space<vmem>>, vector<8x32xf32>
    %c0_5 = arith.constant 0 : index
    %c0_6 = arith.constant 0 : index
    %3 = vector.load %arg8[%c0_5, %c0_6] : memref<32x32xf32, #tpu.memory_space<vmem>>, vector<32x32xf32>
    %c0_7 = arith.constant 0 : index
    %c0_8 = arith.constant 0 : index
    %4 = vector.load %arg9[%c0_7, %c0_8] : memref<32x32xf32, #tpu.memory_space<vmem>>, vector<32x32xf32>
    %c0_9 = arith.constant 0 : index
    %c0_10 = arith.constant 0 : index
    %5 = vector.load %arg4[%c0_9, %c0_10] : memref<32x256xf32, #tpu.memory_space<vmem>>, vector<32x96xf32>
    %cst = arith.constant dense<0.000000e+00> : vector<8x96xf32>
    %6 = tpu.matmul %0, %5, %cst {dimension_numbers = #tpu.dot_dimension_numbers<[1], [0], [0], [1], [0, 0, 1, 1], [], []>} : vector<8x32xf32>, vector<32x96xf32>, vector<8x96xf32> -> vector<8x96xf32>
    %c0_11 = arith.constant 0 : index
    %c0_12 = arith.constant 0 : index
    %7 = vector.load %arg7[%c0_11, %c0_12] : memref<16x256xf32, #tpu.memory_space<vmem>>, vector<1x96xf32>
    %8 = vector.broadcast %7 : vector<1x96xf32> to vector<8x96xf32>
    %9 = arith.addf %6, %8 : vector<8x96xf32>
    %10 = vector.extract_strided_slice %9 {offsets = [0, 0], sizes = [8, 32], strides = [1, 1]} : vector<8x96xf32> to vector<8x32xf32>
    %11 = vector.extract_strided_slice %9 {offsets = [0, 32], sizes = [8, 32], strides = [1, 1]} : vector<8x96xf32> to vector<8x32xf32>
    %12 = vector.extract_strided_slice %9 {offsets = [0, 64], sizes = [8, 32], strides = [1, 1]} : vector<8x96xf32> to vector<8x32xf32>
    %13 = tpu.concatenate %11, %11, %11, %11 in 0 : vector<8x32xf32>, vector<8x32xf32>, vector<8x32xf32>, vector<8x32xf32> -> vector<32x32xf32>
    %14 = arith.mulf %13, %3 : vector<32x32xf32>
    %15 = tpu.concatenate %12, %12, %12, %12 in 0 : vector<8x32xf32>, vector<8x32xf32>, vector<8x32xf32>, vector<8x32xf32> -> vector<32x32xf32>
    %16 = arith.mulf %15, %3 : vector<32x32xf32>
    %cst_13 = arith.constant dense<0.000000e+00> : vector<8x32xf32>
    %17 = tpu.matmul %10, %14, %cst_13 {dimension_numbers = #tpu.dot_dimension_numbers<[1], [1], [0], [0], [0, 0, 1, 0], [], []>} : vector<8x32xf32>, vector<32x32xf32>, vector<8x32xf32> -> vector<8x32xf32>
    %cst_14 = arith.constant dense<0xFF800000> : vector<8xf32>
    %18 = vector.multi_reduction <maximumf>, %17, %cst_14 [1] : vector<8x32xf32> to vector<8xf32>
    %19 = vector.shape_cast %18 : vector<8xf32> to vector<8x1xf32>
    %20 = vector.broadcast %19 : vector<8x1xf32> to vector<8x32xf32>
    %21 = arith.subf %17, %20 : vector<8x32xf32>
    %22 = math.exp %21 : vector<8x32xf32>
    %cst_15 = arith.constant dense<0.000000e+00> : vector<8x32xf32>
    %23 = tpu.matmul %22, %16, %cst_15 {dimension_numbers = #tpu.dot_dimension_numbers<[1], [0], [0], [1], [0, 0, 1, 1], [], []>} : vector<8x32xf32>, vector<32x32xf32>, vector<8x32xf32> -> vector<8x32xf32>
    %cst_16 = arith.constant dense<0.000000e+00> : vector<8x32xf32>
    %24 = tpu.matmul %22, %3, %cst_16 {dimension_numbers = #tpu.dot_dimension_numbers<[1], [0], [0], [1], [0, 0, 1, 1], [], []>} : vector<8x32xf32>, vector<32x32xf32>, vector<8x32xf32> -> vector<8x32xf32>
    %cst_17 = arith.constant 1.000000e-30 : f32
    %25 = vector.broadcast %cst_17 : f32 to vector<8x32xf32>
    %26 = arith.maximumf %24, %25 : vector<8x32xf32>
    %27 = tpu.reciprocal %26 {approx = true} : vector<8x32xf32> -> vector<8x32xf32>
    %28 = arith.mulf %24, %27 : vector<8x32xf32>
    %cst_18 = arith.constant 2.000000e+00 : f32
    %29 = vector.broadcast %cst_18 : f32 to vector<8x32xf32>
    %30 = arith.subf %29, %28 : vector<8x32xf32>
    %31 = arith.mulf %27, %30 : vector<8x32xf32>
    %32 = arith.mulf %23, %31 : vector<8x32xf32>
    %c0_19 = arith.constant 0 : index
    %c96 = arith.constant 96 : index
    %33 = vector.load %arg4[%c0_19, %c96] : memref<32x256xf32, #tpu.memory_space<vmem>>, vector<32x32xf32>
    %cst_20 = arith.constant dense<0.000000e+00> : vector<8x32xf32>
    %34 = tpu.matmul %32, %33, %cst_20 {dimension_numbers = #tpu.dot_dimension_numbers<[1], [0], [0], [1], [0, 0, 1, 1], [], []>} : vector<8x32xf32>, vector<32x32xf32>, vector<8x32xf32> -> vector<8x32xf32>
    %c0_21 = arith.constant 0 : index
    %c96_22 = arith.constant 96 : index
    %35 = vector.load %arg7[%c0_21, %c96_22] : memref<16x256xf32, #tpu.memory_space<vmem>>, vector<1x32xf32>
    %36 = vector.broadcast %35 : vector<1x32xf32> to vector<8x32xf32>
    %37 = arith.addf %34, %36 : vector<8x32xf32>
    %38 = arith.addf %37, %0 : vector<8x32xf32>
    %cst_23 = arith.constant dense<0.000000e+00> : vector<8xf32>
    %39 = vector.multi_reduction <add>, %38, %cst_23 [1] : vector<8x32xf32> to vector<8xf32>
    %40 = vector.shape_cast %39 : vector<8xf32> to vector<8x1xf32>
    %cst_24 = arith.constant 3.200000e+01 : f32
    %41 = vector.broadcast %cst_24 : f32 to vector<8x1xf32>
    %42 = arith.divf %40, %41 : vector<8x1xf32>
    %43 = vector.broadcast %42 : vector<8x1xf32> to vector<8x32xf32>
    %44 = arith.subf %38, %43 : vector<8x32xf32>
    %45 = arith.mulf %44, %44 : vector<8x32xf32>
    %cst_25 = arith.constant dense<0.000000e+00> : vector<8xf32>
    %46 = vector.multi_reduction <add>, %45, %cst_25 [1] : vector<8x32xf32> to vector<8xf32>
    %47 = vector.shape_cast %46 : vector<8xf32> to vector<8x1xf32>
    %cst_26 = arith.constant 3.200000e+01 : f32
    %48 = vector.broadcast %cst_26 : f32 to vector<8x1xf32>
    %49 = arith.divf %47, %48 : vector<8x1xf32>
    %50 = vector.broadcast %42 : vector<8x1xf32> to vector<8x32xf32>
    %51 = arith.subf %38, %50 : vector<8x32xf32>
    %cst_27 = arith.constant 9.99999974E-6 : f32
    %52 = vector.broadcast %cst_27 : f32 to vector<8x1xf32>
    %53 = arith.addf %49, %52 : vector<8x1xf32>
    %54 = math.rsqrt %53 : vector<8x1xf32>
    %55 = vector.broadcast %54 : vector<8x1xf32> to vector<8x32xf32>
    %56 = arith.mulf %51, %55 : vector<8x32xf32>
    %c2 = arith.constant 2 : index
    %c0_28 = arith.constant 0 : index
    %57 = vector.load %arg7[%c2, %c0_28] : memref<16x256xf32, #tpu.memory_space<vmem>>, vector<1x32xf32>
    %58 = vector.broadcast %57 : vector<1x32xf32> to vector<8x32xf32>
    %59 = arith.mulf %56, %58 : vector<8x32xf32>
    %c3 = arith.constant 3 : index
    %c0_29 = arith.constant 0 : index
    %60 = vector.load %arg7[%c3, %c0_29] : memref<16x256xf32, #tpu.memory_space<vmem>>, vector<1x32xf32>
    %61 = vector.broadcast %60 : vector<1x32xf32> to vector<8x32xf32>
    %62 = arith.addf %59, %61 : vector<8x32xf32>
    %c0_30 = arith.constant 0 : index
    %c128 = arith.constant 128 : index
    %63 = vector.load %arg4[%c0_30, %c128] : memref<32x256xf32, #tpu.memory_space<vmem>>, vector<32x32xf32>
    %cst_31 = arith.constant dense<0.000000e+00> : vector<8x32xf32>
    %64 = tpu.matmul %62, %63, %cst_31 {dimension_numbers = #tpu.dot_dimension_numbers<[1], [0], [0], [1], [0, 0, 1, 1], [], []>} : vector<8x32xf32>, vector<32x32xf32>, vector<8x32xf32> -> vector<8x32xf32>
    %c0_32 = arith.constant 0 : index
    %c128_33 = arith.constant 128 : index
    %65 = vector.load %arg7[%c0_32, %c128_33] : memref<16x256xf32, #tpu.memory_space<vmem>>, vector<1x32xf32>
    %66 = vector.broadcast %65 : vector<1x32xf32> to vector<8x32xf32>
    %67 = arith.addf %64, %66 : vector<8x32xf32>
    %c0_34 = arith.constant 0 : index
    %c160 = arith.constant 160 : index
    %68 = vector.load %arg4[%c0_34, %c160] : memref<32x256xf32, #tpu.memory_space<vmem>>, vector<32x32xf32>
    %cst_35 = arith.constant dense<0.000000e+00> : vector<8x32xf32>
    %69 = tpu.matmul %1, %68, %cst_35 {dimension_numbers = #tpu.dot_dimension_numbers<[1], [0], [0], [1], [0, 0, 1, 1], [], []>} : vector<8x32xf32>, vector<32x32xf32>, vector<8x32xf32> -> vector<8x32xf32>
    %c0_36 = arith.constant 0 : index
    %c160_37 = arith.constant 160 : index
    %70 = vector.load %arg7[%c0_36, %c160_37] : memref<16x256xf32, #tpu.memory_space<vmem>>, vector<1x32xf32>
    %71 = vector.broadcast %70 : vector<1x32xf32> to vector<8x32xf32>
    %72 = arith.addf %69, %71 : vector<8x32xf32>
    %c0_38 = arith.constant 0 : index
    %c192 = arith.constant 192 : index
    %73 = vector.load %arg4[%c0_38, %c192] : memref<32x256xf32, #tpu.memory_space<vmem>>, vector<32x32xf32>
    %cst_39 = arith.constant dense<0.000000e+00> : vector<8x32xf32>
    %74 = tpu.matmul %2, %73, %cst_39 {dimension_numbers = #tpu.dot_dimension_numbers<[1], [0], [0], [1], [0, 0, 1, 1], [], []>} : vector<8x32xf32>, vector<32x32xf32>, vector<8x32xf32> -> vector<8x32xf32>
    %c0_40 = arith.constant 0 : index
    %c192_41 = arith.constant 192 : index
    %75 = vector.load %arg7[%c0_40, %c192_41] : memref<16x256xf32, #tpu.memory_space<vmem>>, vector<1x32xf32>
    %76 = vector.broadcast %75 : vector<1x32xf32> to vector<8x32xf32>
    %77 = arith.addf %74, %76 : vector<8x32xf32>
    %78 = tpu.concatenate %72, %72, %72, %72 in 0 : vector<8x32xf32>, vector<8x32xf32>, vector<8x32xf32>, vector<8x32xf32> -> vector<32x32xf32>
    %79 = arith.mulf %78, %4 : vector<32x32xf32>
    %80 = tpu.concatenate %77, %77, %77, %77 in 0 : vector<8x32xf32>, vector<8x32xf32>, vector<8x32xf32>, vector<8x32xf32> -> vector<32x32xf32>
    %81 = arith.mulf %80, %4 : vector<32x32xf32>
    %cst_42 = arith.constant dense<0.000000e+00> : vector<8x32xf32>
    %82 = tpu.matmul %67, %79, %cst_42 {dimension_numbers = #tpu.dot_dimension_numbers<[1], [1], [0], [0], [0, 0, 1, 0], [], []>} : vector<8x32xf32>, vector<32x32xf32>, vector<8x32xf32> -> vector<8x32xf32>
    %cst_43 = arith.constant dense<0xFF800000> : vector<8xf32>
    %83 = vector.multi_reduction <maximumf>, %82, %cst_43 [1] : vector<8x32xf32> to vector<8xf32>
    %84 = vector.shape_cast %83 : vector<8xf32> to vector<8x1xf32>
    %85 = vector.broadcast %84 : vector<8x1xf32> to vector<8x32xf32>
    %86 = arith.subf %82, %85 : vector<8x32xf32>
    %87 = math.exp %86 : vector<8x32xf32>
    %cst_44 = arith.constant dense<0.000000e+00> : vector<8x32xf32>
    %88 = tpu.matmul %87, %81, %cst_44 {dimension_numbers = #tpu.dot_dimension_numbers<[1], [0], [0], [1], [0, 0, 1, 1], [], []>} : vector<8x32xf32>, vector<32x32xf32>, vector<8x32xf32> -> vector<8x32xf32>
    %cst_45 = arith.constant dense<0.000000e+00> : vector<8x32xf32>
    %89 = tpu.matmul %87, %4, %cst_45 {dimension_numbers = #tpu.dot_dimension_numbers<[1], [0], [0], [1], [0, 0, 1, 1], [], []>} : vector<8x32xf32>, vector<32x32xf32>, vector<8x32xf32> -> vector<8x32xf32>
    %cst_46 = arith.constant 1.000000e-30 : f32
    %90 = vector.broadcast %cst_46 : f32 to vector<8x32xf32>
    %91 = arith.maximumf %89, %90 : vector<8x32xf32>
    %92 = tpu.reciprocal %91 {approx = true} : vector<8x32xf32> -> vector<8x32xf32>
    %93 = arith.mulf %89, %92 : vector<8x32xf32>
    %cst_47 = arith.constant 2.000000e+00 : f32
    %94 = vector.broadcast %cst_47 : f32 to vector<8x32xf32>
    %95 = arith.subf %94, %93 : vector<8x32xf32>
    %96 = arith.mulf %92, %95 : vector<8x32xf32>
    %97 = arith.mulf %88, %96 : vector<8x32xf32>
    %c0_48 = arith.constant 0 : index
    %c224 = arith.constant 224 : index
    %98 = vector.load %arg4[%c0_48, %c224] : memref<32x256xf32, #tpu.memory_space<vmem>>, vector<32x32xf32>
    %cst_49 = arith.constant dense<0.000000e+00> : vector<8x32xf32>
    %99 = tpu.matmul %97, %98, %cst_49 {dimension_numbers = #tpu.dot_dimension_numbers<[1], [0], [0], [1], [0, 0, 1, 1], [], []>} : vector<8x32xf32>, vector<32x32xf32>, vector<8x32xf32> -> vector<8x32xf32>
    %c0_50 = arith.constant 0 : index
    %c224_51 = arith.constant 224 : index
    %100 = vector.load %arg7[%c0_50, %c224_51] : memref<16x256xf32, #tpu.memory_space<vmem>>, vector<1x32xf32>
    %101 = vector.broadcast %100 : vector<1x32xf32> to vector<8x32xf32>
    %102 = arith.addf %99, %101 : vector<8x32xf32>
    %103 = arith.addf %62, %102 : vector<8x32xf32>
    %cst_52 = arith.constant dense<0.000000e+00> : vector<8xf32>
    %104 = vector.multi_reduction <add>, %103, %cst_52 [1] : vector<8x32xf32> to vector<8xf32>
    %105 = vector.shape_cast %104 : vector<8xf32> to vector<8x1xf32>
    %cst_53 = arith.constant 3.200000e+01 : f32
    %106 = vector.broadcast %cst_53 : f32 to vector<8x1xf32>
    %107 = arith.divf %105, %106 : vector<8x1xf32>
    %108 = vector.broadcast %107 : vector<8x1xf32> to vector<8x32xf32>
    %109 = arith.subf %103, %108 : vector<8x32xf32>
    %110 = arith.mulf %109, %109 : vector<8x32xf32>
    %cst_54 = arith.constant dense<0.000000e+00> : vector<8xf32>
    %111 = vector.multi_reduction <add>, %110, %cst_54 [1] : vector<8x32xf32> to vector<8xf32>
    %112 = vector.shape_cast %111 : vector<8xf32> to vector<8x1xf32>
    %cst_55 = arith.constant 3.200000e+01 : f32
    %113 = vector.broadcast %cst_55 : f32 to vector<8x1xf32>
    %114 = arith.divf %112, %113 : vector<8x1xf32>
    %115 = vector.broadcast %107 : vector<8x1xf32> to vector<8x32xf32>
    %116 = arith.subf %103, %115 : vector<8x32xf32>
    %cst_56 = arith.constant 9.99999974E-6 : f32
    %117 = vector.broadcast %cst_56 : f32 to vector<8x1xf32>
    %118 = arith.addf %114, %117 : vector<8x1xf32>
    %119 = math.rsqrt %118 : vector<8x1xf32>
    %120 = vector.broadcast %119 : vector<8x1xf32> to vector<8x32xf32>
    %121 = arith.mulf %116, %120 : vector<8x32xf32>
    %c4 = arith.constant 4 : index
    %c0_57 = arith.constant 0 : index
    %122 = vector.load %arg7[%c4, %c0_57] : memref<16x256xf32, #tpu.memory_space<vmem>>, vector<1x32xf32>
    %123 = vector.broadcast %122 : vector<1x32xf32> to vector<8x32xf32>
    %124 = arith.mulf %121, %123 : vector<8x32xf32>
    %c5 = arith.constant 5 : index
    %c0_58 = arith.constant 0 : index
    %125 = vector.load %arg7[%c5, %c0_58] : memref<16x256xf32, #tpu.memory_space<vmem>>, vector<1x32xf32>
    %126 = vector.broadcast %125 : vector<1x32xf32> to vector<8x32xf32>
    %127 = arith.addf %124, %126 : vector<8x32xf32>
    %c0_59 = arith.constant 0 : index
    %c0_60 = arith.constant 0 : index
    %128 = vector.load %arg5[%c0_59, %c0_60] : memref<32x128xf32, #tpu.memory_space<vmem>>, vector<32x128xf32>
    %cst_61 = arith.constant dense<0.000000e+00> : vector<8x128xf32>
    %129 = tpu.matmul %127, %128, %cst_61 {dimension_numbers = #tpu.dot_dimension_numbers<[1], [0], [0], [1], [0, 0, 1, 1], [], []>} : vector<8x32xf32>, vector<32x128xf32>, vector<8x128xf32> -> vector<8x128xf32>
    %c1 = arith.constant 1 : index
    %c0_62 = arith.constant 0 : index
    %130 = vector.load %arg7[%c1, %c0_62] : memref<16x256xf32, #tpu.memory_space<vmem>>, vector<1x128xf32>
    %131 = vector.broadcast %130 : vector<1x128xf32> to vector<8x128xf32>
    %132 = arith.addf %129, %131 : vector<8x128xf32>
    %cst_63 = arith.constant 5.000000e-01 : f32
    %133 = vector.broadcast %cst_63 : f32 to vector<8x128xf32>
    %134 = arith.mulf %133, %132 : vector<8x128xf32>
    %cst_64 = arith.constant 0.707106769 : f32
    %135 = vector.broadcast %cst_64 : f32 to vector<8x128xf32>
    %136 = arith.mulf %132, %135 : vector<8x128xf32>
    %cst_65 = arith.constant 0.000000e+00 : f32
    %137 = vector.broadcast %cst_65 : f32 to vector<8x128xf32>
    %138 = arith.cmpf oge, %136, %137 : vector<8x128xf32>
    %cst_66 = arith.constant 1.000000e+00 : f32
    %cst_67 = arith.constant -1.000000e+00 : f32
    %139 = vector.broadcast %cst_66 : f32 to vector<8x128xf32>
    %140 = vector.broadcast %cst_67 : f32 to vector<8x128xf32>
    %141 = arith.select %138, %139, %140 : vector<8x128xi1>, vector<8x128xf32>
    %142 = math.absf %136 : vector<8x128xf32>
    %cst_68 = arith.constant 0.327591091 : f32
    %143 = vector.broadcast %cst_68 : f32 to vector<8x128xf32>
    %144 = arith.mulf %143, %142 : vector<8x128xf32>
    %cst_69 = arith.constant 1.000000e+00 : f32
    %145 = vector.broadcast %cst_69 : f32 to vector<8x128xf32>
    %146 = arith.addf %145, %144 : vector<8x128xf32>
    %cst_70 = arith.constant 1.000000e+00 : f32
    %147 = vector.broadcast %cst_70 : f32 to vector<8x128xf32>
    %148 = arith.divf %147, %146 : vector<8x128xf32>
    %cst_71 = arith.constant 1.06140542 : f32
    %149 = vector.broadcast %cst_71 : f32 to vector<8x128xf32>
    %150 = arith.mulf %149, %148 : vector<8x128xf32>
    %cst_72 = arith.constant -1.45315206 : f32
    %151 = vector.broadcast %cst_72 : f32 to vector<8x128xf32>
    %152 = arith.addf %150, %151 : vector<8x128xf32>
    %153 = arith.mulf %152, %148 : vector<8x128xf32>
    %cst_73 = arith.constant 1.42141378 : f32
    %154 = vector.broadcast %cst_73 : f32 to vector<8x128xf32>
    %155 = arith.addf %153, %154 : vector<8x128xf32>
    %156 = arith.mulf %155, %148 : vector<8x128xf32>
    %cst_74 = arith.constant -0.284496725 : f32
    %157 = vector.broadcast %cst_74 : f32 to vector<8x128xf32>
    %158 = arith.addf %156, %157 : vector<8x128xf32>
    %159 = arith.mulf %158, %148 : vector<8x128xf32>
    %cst_75 = arith.constant 0.254829586 : f32
    %160 = vector.broadcast %cst_75 : f32 to vector<8x128xf32>
    %161 = arith.addf %159, %160 : vector<8x128xf32>
    %162 = arith.mulf %161, %148 : vector<8x128xf32>
    %cst_76 = arith.constant 0.000000e+00 : f32
    %163 = vector.broadcast %cst_76 : f32 to vector<8x128xf32>
    %164 = arith.subf %163, %142 : vector<8x128xf32>
    %165 = arith.mulf %164, %142 : vector<8x128xf32>
    %166 = math.exp %165 : vector<8x128xf32>
    %167 = arith.mulf %162, %166 : vector<8x128xf32>
    %cst_77 = arith.constant 1.000000e+00 : f32
    %168 = vector.broadcast %cst_77 : f32 to vector<8x128xf32>
    %169 = arith.subf %168, %167 : vector<8x128xf32>
    %170 = arith.mulf %141, %169 : vector<8x128xf32>
    %cst_78 = arith.constant 1.000000e+00 : f32
    %171 = vector.broadcast %cst_78 : f32 to vector<8x128xf32>
    %172 = arith.addf %171, %170 : vector<8x128xf32>
    %173 = arith.mulf %134, %172 : vector<8x128xf32>
    %c0_79 = arith.constant 0 : index
    %c0_80 = arith.constant 0 : index
    %174 = vector.load %arg6[%c0_79, %c0_80] : memref<128x32xf32, #tpu.memory_space<vmem>>, vector<128x32xf32>
    %cst_81 = arith.constant dense<0.000000e+00> : vector<8x32xf32>
    %175 = tpu.matmul %173, %174, %cst_81 {dimension_numbers = #tpu.dot_dimension_numbers<[1], [0], [0], [1], [0, 0, 1, 1], [], []>} : vector<8x128xf32>, vector<128x32xf32>, vector<8x32xf32> -> vector<8x32xf32>
    %c8 = arith.constant 8 : index
    %c0_82 = arith.constant 0 : index
    %176 = vector.load %arg7[%c8, %c0_82] : memref<16x256xf32, #tpu.memory_space<vmem>>, vector<1x32xf32>
    %177 = vector.broadcast %176 : vector<1x32xf32> to vector<8x32xf32>
    %178 = arith.addf %175, %177 : vector<8x32xf32>
    %179 = arith.addf %127, %178 : vector<8x32xf32>
    %cst_83 = arith.constant dense<0.000000e+00> : vector<8xf32>
    %180 = vector.multi_reduction <add>, %179, %cst_83 [1] : vector<8x32xf32> to vector<8xf32>
    %181 = vector.shape_cast %180 : vector<8xf32> to vector<8x1xf32>
    %cst_84 = arith.constant 3.200000e+01 : f32
    %182 = vector.broadcast %cst_84 : f32 to vector<8x1xf32>
    %183 = arith.divf %181, %182 : vector<8x1xf32>
    %184 = vector.broadcast %183 : vector<8x1xf32> to vector<8x32xf32>
    %185 = arith.subf %179, %184 : vector<8x32xf32>
    %186 = arith.mulf %185, %185 : vector<8x32xf32>
    %cst_85 = arith.constant dense<0.000000e+00> : vector<8xf32>
    %187 = vector.multi_reduction <add>, %186, %cst_85 [1] : vector<8x32xf32> to vector<8xf32>
    %188 = vector.shape_cast %187 : vector<8xf32> to vector<8x1xf32>
    %cst_86 = arith.constant 3.200000e+01 : f32
    %189 = vector.broadcast %cst_86 : f32 to vector<8x1xf32>
    %190 = arith.divf %188, %189 : vector<8x1xf32>
    %191 = vector.broadcast %183 : vector<8x1xf32> to vector<8x32xf32>
    %192 = arith.subf %179, %191 : vector<8x32xf32>
    %cst_87 = arith.constant 9.99999974E-6 : f32
    %193 = vector.broadcast %cst_87 : f32 to vector<8x1xf32>
    %194 = arith.addf %190, %193 : vector<8x1xf32>
    %195 = math.rsqrt %194 : vector<8x1xf32>
    %196 = vector.broadcast %195 : vector<8x1xf32> to vector<8x32xf32>
    %197 = arith.mulf %192, %196 : vector<8x32xf32>
    %c6 = arith.constant 6 : index
    %c0_88 = arith.constant 0 : index
    %198 = vector.load %arg7[%c6, %c0_88] : memref<16x256xf32, #tpu.memory_space<vmem>>, vector<1x32xf32>
    %199 = vector.broadcast %198 : vector<1x32xf32> to vector<8x32xf32>
    %200 = arith.mulf %197, %199 : vector<8x32xf32>
    %c7 = arith.constant 7 : index
    %c0_89 = arith.constant 0 : index
    %201 = vector.load %arg7[%c7, %c0_89] : memref<16x256xf32, #tpu.memory_space<vmem>>, vector<1x32xf32>
    %202 = vector.broadcast %201 : vector<1x32xf32> to vector<8x32xf32>
    %203 = arith.addf %200, %202 : vector<8x32xf32>
    %c0_90 = arith.constant 0 : index
    %c0_91 = arith.constant 0 : index
    %204 = vector.load %arg10[%c0_90, %c0_91] : memref<8x32xf32, #tpu.memory_space<vmem>>, vector<8x32xf32>
    tpu.vector_store %arg10[%c0_90, %c0_91], %203 {strides = array<i32>} : memref<8x32xf32, #tpu.memory_space<vmem>>, vector<8x32xf32>,
    return
  }
  func.func @transform_0(%arg0: i32) -> (i32, i32) {
    %c0_i32 = arith.constant 0 : i32
    %c0_i32_0 = arith.constant 0 : i32
    return %arg0, %c0_i32 : i32, i32
  }
  func.func @transform_1(%arg0: i32) -> (i32, i32) {
    %c0_i32 = arith.constant 0 : i32
    %c0_i32_0 = arith.constant 0 : i32
    return %arg0, %c0_i32 : i32, i32
  }
  func.func @transform_2(%arg0: i32) -> (i32, i32) {
    %c0_i32 = arith.constant 0 : i32
    %c0_i32_0 = arith.constant 0 : i32
    return %arg0, %c0_i32 : i32, i32
  }
  func.func @transform_3(%arg0: i32) -> (i32, i32) {
    %c0_i32 = arith.constant 0 : i32
    %c0_i32_0 = arith.constant 0 : i32
    %c0_i32_1 = arith.constant 0 : i32
    return %c0_i32, %c0_i32_0 : i32, i32
  }
  func.func @transform_4(%arg0: i32) -> (i32, i32) {
    %c0_i32 = arith.constant 0 : i32
    %c0_i32_0 = arith.constant 0 : i32
    %c0_i32_1 = arith.constant 0 : i32
    return %c0_i32, %c0_i32_0 : i32, i32
  }
  func.func @transform_5(%arg0: i32) -> (i32, i32) {
    %c0_i32 = arith.constant 0 : i32
    %c0_i32_0 = arith.constant 0 : i32
    %c0_i32_1 = arith.constant 0 : i32
    return %c0_i32, %c0_i32_0 : i32, i32
  }
  func.func @transform_6(%arg0: i32) -> (i32, i32) {
    %c0_i32 = arith.constant 0 : i32
    %c0_i32_0 = arith.constant 0 : i32
    %c0_i32_1 = arith.constant 0 : i32
    return %c0_i32, %c0_i32_0 : i32, i32
  }
  func.func @transform_7(%arg0: i32) -> (i32, i32) {
    %c0_i32 = arith.constant 0 : i32
    %c0_i32_0 = arith.constant 0 : i32
    %c0_i32_1 = arith.constant 0 : i32
    return %c0_i32, %c0_i32_0 : i32, i32
  }
  func.func @transform_8(%arg0: i32) -> (i32, i32) {
    %c0_i32 = arith.constant 0 : i32
    %c0_i32_0 = arith.constant 0 : i32
    %c0_i32_1 = arith.constant 0 : i32
    return %c0_i32, %c0_i32_0 : i32, i32
  }
  func.func @transform_9(%arg0: i32) -> (i32, i32) {
    %c0_i32 = arith.constant 0 : i32
    %c0_i32_0 = arith.constant 0 : i32
    return %arg0, %c0_i32 : i32, i32
  }
}

</mosaic_0001>

<bundles_post_ra>
// kernel: tpu_custom_call.1
= control target key start
LH: loop header
LB: loop body
LE: loop exit
PB: predicated region body
PF: predicated region fallthrough
CT: control target
= control target key end

     0   :  { %s3333_s0 = inlined_call_operand.hbm [shape: f32[16,32], index: 0, kind: input, shape index: {}]   ;;  %s3334_s1 = inlined_call_operand.hbm [shape: f32[16,32], index: 1, kind: input, shape index: {}]   ;;  %s3335_s2 = inlined_call_operand.hbm [shape: f32[16,32], index: 2, kind: input, shape index: {}]   ;;  %s3336_s3 = inlined_call_operand.vmem [shape: f32[32,256], index: 3, kind: input, shape index: {}]   ;;  %s3337_s4 = inlined_call_operand.vmem [shape: f32[32,128], index: 4, kind: input, shape index: {}]   ;;  %s3338_s5 = inlined_call_operand.vmem [shape: f32[128,32], index: 5, kind: input, shape index: {}]   ;;  %s3339_s6 = inlined_call_operand.vmem [shape: f32[16,256], index: 6, kind: input, shape index: {}]   ;;  %s3340_s7 = inlined_call_operand.vmem [shape: f32[32,32], index: 7, kind: input, shape index: {}]   ;;  %s3341_s8 = inlined_call_operand.hbm [shape: f32[32,32], index: 8, kind: input, shape index: {}]   ;;  %s3342_s9 = inlined_call_operand.hbm [shape: f32[16,32], index: 9, kind: output, shape index: {}]  }
   0x1   :  { %3364 = sst [smem:[#allocation21_spill]] %s3334_s1 }
   0x2   :  { %3365 = sst [smem:[#allocation22_spill]] %s3337_s4 }
   0x3   :  { %3366 = sst [smem:[#allocation23_spill]] %s3338_s5 }
   0x4   :  { %3367 = sst [smem:[#allocation24_spill]] %s3339_s6 }
   0x5   :  { %3368 = sst [smem:[#allocation25_spill]] %s3342_s9 }
   0x6   :  { %14 = vsyncpa [#allocation3], 0 }
   0x7   :  { %16 = vsyncpa [#allocation3 + $0x1], 0 }
   0x8   :  { %17 = vsyncpa [#allocation6], 0 }
   0x9   :  { %19 = vsyncpa [#allocation6 + $0x1], 0 }
   0xa   :  { %20 = vsyncpa [#allocation9], 0 }
   0xb   :  { %21 = vsyncpa [#allocation4], 0 }
   0xc   :  { %23 = vsyncpa [#allocation4 + $0x1], 0  ;;  %s2716_s30 = smov 0   ;;  %s2718_s10 = smov 0  }
   0xd   :  { %s2720_s11 = smov 0   ;;  %s2722_s12 = smov 0  }
   0xe LB: > { %3369 = sst [smem:[#allocation15_spill]] %s2638_s30  ;;  %s2737_s13 = sadd.s32 1, %s2650_s12   ;;  %s2650_s12 = sphi %s2722_s12, %s3405_s12   ;;  %s2646_s11 = sphi %s2720_s11, %s3409_s11   ;;  %s2642_s10 = sphi %s2718_s10, %s3408_s10   ;;  %s2638_s30 = sphi %s2716_s30, %s3407_s30  }
   0xf   : > { %3370 = sst [smem:[#allocation16_spill]] %s2650_s12  ;;  %s36_s14 = sadd.s32 1, %s2646_s11 }
  0x10   : > { %3371 = sst [smem:[#allocation17_spill]] %s2737_s13  ;;  %s33_s15 = ssub.s32 %s2650_s12, %s2737_s13 }
  0x11   : > { %p3343_p0 = scmp.ne.s32.totalorder %s2646_s11, %s2642_s10  ;;  %p34_p1 = scmp.eq.s32.totalorder %s33_s15, 0 }
  0x12   : > { %p44_p2 = scmp.eq.s32.totalorder %s2650_s12, 0  ;;  %p2335_p4 = scmp.lt.s32.totalorder %s2650_s12, 2 }
  0x13   : > { %s2748_s16 = scalar_select %p34_p1, %s2646_s11, %s36_s14  }
  0x14   : > { %p45_p5 = por %p44_p2, %p3343_p0  ;;  %s3344_s17 = sand.u32 1, %s2646_s11  }
  0x15   : > { %3372 = sst [smem:[#allocation18_spill]] %s2748_s16  ;;  %s2756_s18 = sshll.u32 %s3344_s17, 3 }
  0x16   : > { %s2759_s19 = sshll.u32 %s2650_s12, 7  ;;  %p2761_p6 = pnand %p2335_p4, %p45_p5 }
  0x17   : > { %s323_s21 = sand.u32 1, %s2650_s12   ;;  %s3374_s1 = sld [smem:[#allocation21_spill]] }
  0x18   : > { %s3373_s20 = scalar_select %p2761_p6, 1, 0 }
  0x19   : > { %s327_s25 = scalar_lea.vmem [#allocation5], %s2756_s18  ;;  %s2775_s27 = scalar_lea.sflag [#allocation6], %s323_s21 }
  0x1a   : > { %s334_s26 = sshll.u32 %s327_s25, 4  ;;  %p2781_p8 = pneg %p2761_p6  ;;  %s2773_s26 = int_to_ptr.vmem [resolvable:$true] %s334_s26 }
  0x1c   : > { %s3375_s29 = scalar_select %p2781_p8, 1, 0 }
  0x1d   : > { %s2770_s24 = scalar_lea.hbm %s3374_s1, %s2759_s19  ;;  %s2463_s22 = scalar_lea.hbm %s3374_s1, 256 }
  0x1e   : > { %s2458_s28 = scalar_lea.hbm %s2770_s24, 128  ;;  %p2464_p11 = scmp.lt.u32.totalorder %s2770_s24, %s3374_s1 }
  0x1f   : > { %p2459_p7 = scmp.ne.s32.totalorder %s2770_s24, %s2458_s28  ;;  %p2465_p12 = scmp.lt.u32.totalorder %s2463_s22, %s2458_s28 }
  0x20   : > { %p2467_p1 = scmp.lt.u32.totalorder %s2458_s28, %s2770_s24 }
  0x21   : > { %p2461_p9 = pnand %p2781_p8, %p2459_p7  ;;  %p2466_p13 = por %p2465_p12, %p2464_p11 }
  0x23   : > { %p2462_p10 = pneg %p2461_p9  ;;  %p2468_p2 = por %p2467_p1, %p2466_p13 }
  0x25   : > { %p2469_p4 = pnand %p2468_p2, %p2462_p10 }
  0x27   : > { %2472 = shalt.err (!%p2469_p4)
}
  0x28   : > { %s2473_s21 = scalar_lea.vmem %s2773_s26, 128  ;;  %s2652_s14 = smov [#allocation5]  }
  0x29   : > { %p2474_p5 = scmp.ne.s32.totalorder %s2773_s26, %s2473_s21  ;;  %s2478_s15 = sshll.u32 %s2652_s14, 4  ;;  %s2479_s15 = int_to_ptr.vmem [resolvable:$false] %s2478_s15 }
  0x2a   : > { %s2480_s23 = scalar_lea.vmem %s2479_s15, 256  ;;  %p2481_p3 = scmp.lt.s32.totalorder %s2773_s26, %s2479_s15 }
  0x2b   : > { %p2476_p7 = pnand %p2474_p5, %p2781_p8  ;;  %p2482_p0 = scmp.lt.s32.totalorder %s2480_s23, %s2473_s21 }
  0x2d   : > { %p2477_p9 = pneg %p2476_p7  ;;  %p2483_p11 = por %p2482_p0, %p2481_p3 }
  0x2f   : > { %p2484_p12 = pnand %p2483_p11, %p2477_p9 }
  0x31   : > { %2487 = shalt.err (!%p2484_p12)
}
  0x32   : > { %2326 = dma.hbm_to_vmem [thread:$0]  (!%p2761_p6), %s2770_s24, 128, %s2773_s26, %s2775_s27  }
  0x33   : > { %s2806_s28 = sadd.s32 4294967295, %s2650_s12   ;;  %s1897_s22 = sadd.s32 4294967294, %s2650_s12  }
  0x34   : > { %p49_p0 = scmp.ne.s32.totalorder %s2642_s10, %s2638_s30  ;;  %p3354_p3 = scmp.eq.s32.totalorder %s2806_s28, 0 }
  0x35   : > { %p251_p10 = scmp.eq.s32.totalorder %s2806_s28, 1  ;;  %p257_p13 = scmp.eq.s32.totalorder %s1897_s22, 1 }
  0x36   : > { %p2815_p1 = por %p3354_p3, %p49_p0  ;;  %p1898_p2 = scmp.ge.s32.totalorder %s2650_s12, 1 }
  0x37   : > { %p3377_p4 = scmp.ne.s32.totalorder %s2646_s11, %s2642_s10  ;;  %p2827_p7 = por %p257_p13, %p49_p0 }
  0x38   : > { %s3376_s25 = scalar_select %p2815_p1, 1, 0 }
  0x39   : > { %p2823_p5 = por %p251_p10, %p3377_p4  ;;  %p264_p9 = scmp.lt.s32.totalorder %s2650_s12, 3 }
  0x3a   : > { %s3380_s26 = scalar_select %p2827_p7, 1, 0 }
  0x3b   : > { %s3378_s24 = scalar_select %p2823_p5, 1, 0 }
  0x3c   : > { %3381 = sst [smem:[#allocation20_spill]] %s3380_s26  ;;  %p2832_p11 = pnand %p1898_p2, %p264_p9 }
  0x3d   : > { %3379 = sst [smem:[#allocation19_spill]] %s3378_s24  ;;  %s2653_s14 = smov [#allocation8]  }
  0x3e   : > { %s3382_s21 = scalar_select %p2832_p11, 1, 0 }
  0x3f   : > { %s291_s15 = sshll.u32 %s2653_s14, 4  ;;  %p2316_p12 = pneg %p2832_p11  ;;  %s2836_s15 = int_to_ptr.vmem [resolvable:$true] %s291_s15 }
  0x40   : > { %s2844_s17 = scalar_lea.hbm %s3333_s0, %s2759_s19  ;;  %s309_s16 = scalar_lea.vmem [#allocation2], %s2756_s18 }
  0x41   : > { %p2848_p0 = pnand %p2316_p12, %p3354_p3  ;;  %s316_s13 = sshll.u32 %s309_s16, 4  ;;  %s2853_s13 = int_to_ptr.vmem [resolvable:$true] %s316_s13 }
  0x42   : > { %s2859_s26 = scalar_lea.hbm %s3335_s2, %s2759_s19  ;;  %s2488_s23 = scalar_lea.hbm %s3341_s8, 512 }
  0x43   : > { %p2489_p10 = scmp.ne.s32.totalorder %s3341_s8, %s2488_s23  ;;  %p2490_p13 = pneg %p2848_p0 }
  0x44   : > { %p2495_p9 = scmp.lt.u32.totalorder %s2488_s23, %s3341_s8 }
  0x45   : > { %p2491_p2 = pnand %p2490_p13, %p2489_p10 }
  0x47   : > { %p2492_p4 = pneg %p2491_p2 }
  0x49   : > { %p2497_p12 = pnand %p2495_p9, %p2492_p4 }
  0x4b   : > { %2500 = shalt.err (!%p2497_p12)
}
  0x4c   : > { %s2501_s12 = scalar_lea.vmem %s2836_s15, 512  ;;  %p2509_p1 = scmp.lt.s32.totalorder %s2836_s15, %s2836_s15 }
  0x4d   : > { %p2502_p3 = scmp.ne.s32.totalorder %s2836_s15, %s2501_s12  ;;  %p2510_p11 = scmp.lt.s32.totalorder %s2501_s12, %s2501_s12 }
  0x4f   : > { %p2504_p7 = pnand %p2502_p3, %p2490_p13  ;;  %p2511_p6 = por %p2510_p11, %p2509_p1 }
  0x51   : > { %p2505_p5 = pneg %p2504_p7 }
  0x53   : > { %p2512_p8 = pnand %p2511_p6, %p2505_p5 }
  0x55   : > { %2515 = shalt.err (!%p2512_p8)
}
  0x56   : > { %s2654_s9 = smov 128   ;;  %s2655_s5 = smov 8  }
  0x57   : > { %2319 = dma.hbm_to_vmem [thread:$0]  (!%p2848_p0), %s3341_s8, 512, %s2836_s15, [#allocation9], %s2654_s9, %s2654_s9, %s2655_s5  }
  0x58   : > { %s3384_s24 = sand.u32 1, %s2646_s11   ;;  %s2516_s23 = scalar_lea.hbm %s2844_s17, 128 }
  0x59   : > { %s306_s14 = scalar_lea.sflag [#allocation3], %s3384_s24  ;;  %p2517_p6 = scmp.ne.s32.totalorder %s2844_s17, %s2516_s23 }
  0x5a   : > { %p3385_p8 = scmp.ne.s32.totalorder %s3375_s29, 0  ;;  %s2521_s12 = scalar_lea.hbm %s3333_s0, 256 }
  0x5b   : > { %p2522_p5 = scmp.lt.u32.totalorder %s2844_s17, %s3333_s0  ;;  %p2523_p7 = scmp.lt.u32.totalorder %s2521_s12, %s2516_s23 }
  0x5c   : > { %p2519_p3 = pnand %p2517_p6, %p3385_p8  ;;  %p2525_p10 = scmp.lt.u32.totalorder %s2516_s23, %s2844_s17 }
  0x5d   : > { %p2524_p11 = por %p2523_p7, %p2522_p5 }
  0x5e   : > { %p2520_p1 = pneg %p2519_p3 }
  0x5f   : > { %p2526_p13 = por %p2525_p10, %p2524_p11 }
  0x61   : > { %p2527_p0 = pnand %p2526_p13, %p2520_p1 }
  0x63   : > { %2530 = shalt.err (!%p2527_p0)
}
  0x64   : > { %s2531_s1 = scalar_lea.vmem %s2853_s13, 128  ;;  %s2656_s15 = smov [#allocation2]  }
  0x65   : > { %p2532_p2 = scmp.ne.s32.totalorder %s2853_s13, %s2531_s1  ;;  %s2536_s9 = sshll.u32 %s2656_s15, 4  ;;  %s2537_s9 = int_to_ptr.vmem [resolvable:$false] %s2536_s9 }
  0x66   : > { %s2538_s4 = scalar_lea.vmem %s2537_s9, 256  ;;  %p2539_p12 = scmp.lt.s32.totalorder %s2853_s13, %s2537_s9 }
  0x67   : > { %p2534_p4 = pnand %p2532_p2, %p3385_p8  ;;  %p2540_p6 = scmp.lt.s32.totalorder %s2538_s4, %s2531_s1 }
  0x69   : > { %p2535_p9 = pneg %p2534_p4  ;;  %p2541_p3 = por %p2540_p6, %p2539_p12 }
  0x6b   : > { %p2542_p5 = pnand %p2541_p3, %p2535_p9 }
  0x6d   : > { %2545 = shalt.err (!%p2542_p5)
}
  0x6e   : > { %p3386_p1 = scmp.ne.s32.totalorder %s3373_s20, 0  ;;  %s345_s6 = scalar_lea.vmem [#allocation7], %s2756_s18 }
  0x6f   : > { %s352_s5 = sshll.u32 %s345_s6, 4  ;;  %s2546_s30 = scalar_lea.hbm %s2859_s26, 128  ;;  %s353_s5 = int_to_ptr.vmem [resolvable:$true] %s352_s5 }
  0x70   : > { %2323 = dma.hbm_to_vmem [thread:$0]  (!%p3386_p1), %s2844_s17, 128, %s2853_s13, %s306_s14  }
  0x71   : > { %p2547_p7 = scmp.ne.s32.totalorder %s2859_s26, %s2546_s30  ;;  %s2551_s23 = scalar_lea.hbm %s3335_s2, 256 }
  0x72   : > { %p2552_p13 = scmp.lt.u32.totalorder %s2859_s26, %s3335_s2  ;;  %p2553_p0 = scmp.lt.u32.totalorder %s2551_s23, %s2546_s30 }
  0x73   : > { %p2549_p11 = pnand %p2547_p7, %p3385_p8  ;;  %p2555_p4 = scmp.lt.u32.totalorder %s2546_s30, %s2859_s26 }
  0x74   : > { %p2554_p2 = por %p2553_p0, %p2552_p13 }
  0x75   : > { %p2550_p10 = pneg %p2549_p11 }
  0x76   : > { %p2556_p9 = por %p2555_p4, %p2554_p2 }
  0x78   : > { %p2557_p12 = pnand %p2556_p9, %p2550_p10 }
  0x7a   : > { %2560 = shalt.err (!%p2557_p12)
}
  0x7b   : > { %s2561_s13 = scalar_lea.vmem %s353_s5, 128  ;;  %s2657_s17 = smov [#allocation7]  }
  0x7c   : > { %p2562_p6 = scmp.ne.s32.totalorder %s353_s5, %s2561_s13  ;;  %s2566_s18 = sshll.u32 %s2657_s17, 4  ;;  %s2567_s18 = int_to_ptr.vmem [resolvable:$false] %s2566_s18 }
  0x7d   : > { %s2568_s14 = scalar_lea.vmem %s2567_s18, 256  ;;  %p2569_p7 = scmp.lt.s32.totalorder %s353_s5, %s2567_s18 }
  0x7e   : > { %p2564_p3 = pnand %p2562_p6, %p3385_p8  ;;  %p2570_p11 = scmp.lt.s32.totalorder %s2568_s14, %s2561_s13 }
  0x80   : > { %p2565_p5 = pneg %p2564_p3  ;;  %p2571_p1 = por %p2570_p11, %p2569_p7 }
  0x82   : > { %p2572_p0 = pnand %p2571_p1, %p2565_p5 }
  0x84   : > { %2575 = shalt.err (!%p2572_p0)
}
  0x85   : > { %p3387_p13 = scmp.ne.s32.totalorder %s3373_s20, 0  ;;  %p3388_p10 = scmp.ne.s32.totalorder %s3382_s21, 0 }
  0x86   : > { %s2927_s29 = sand.u32 (!%p3388_p10), 1, %s2642_s10   ;;  %p3389_p8 = scmp.ne.s32.totalorder (!%p3388_p10), %s3376_s25, 0 }
  0x87   : > { %2329 = dma.hbm_to_vmem [thread:$0]  (!%p3387_p13), %s2859_s26, 128, %s353_s5, %s2775_s27  }
  0x88   : > { %361 = sbr.rel (%p3388_p10) target bundleno = 3823 (0xeef), region = 56  ;;  %s2930_s12 = sshll.u32 (!%p3388_p10), %s2927_s29, 3 }
  0x89   : > { %s364_s1 = scalar_lea.sflag (!%p3388_p10), [#allocation3], %s2927_s29  ;;  %s367_s15 = scalar_lea.vmem (!%p3388_p10), [#allocation2], %s2930_s12 }
  0x8f   : > { %2621 = dma.done.wait (%p3389_p8), %s364_s1, 128  }
  0x90   : > { %2623 = vsyncadd (%p3389_p8), %s364_s1, 4294967168  ;;  %s372_s20 = sand.u32 1, %s2806_s28   ;;  %s376_s26 = scalar_lea.vmem [#allocation5], %s2930_s12 }
  0x91   : > { %s373_s27 = scalar_lea.sflag [#allocation6], %s372_s20 }
  0x92   : > { %2625 = dma.done.wait (%p3389_p8), %s373_s27, 256  }
  0x93   : > { %2627 = vsyncadd (%p3389_p8), %s373_s27, 4294967040  ;;  %s385_s21 = scalar_lea.vmem [#allocation7], %s2930_s12  ;;  %p3390_p1 = scmp.eq.s32.totalorder %s2806_s28, 0 }
  0x95   : > { %2629 = dma.done.wait (%p3390_p1), [#allocation9], 512   ;;  %p3391_p2 = pmov %p3390_p1 }
  0x96   : > { %v2658_v0 = vmov 0.0|0.0   ;;  %vm2659_vm0 = vmmov 0   ;;  %v2660_v1 = vmov 0.0   ;;  %v2958_v2 = vld [vmem:[%s3336_s3] sm:$0xff]  ;;  %v2963_v3 = vld [vmem:[%s3336_s3 + $0x10] sm:$0xff]  ;;  %s2661_s16 = smov 32  }
  0x97   : > { %2631 = vsyncadd (%p3391_p2), [#allocation9], 4294966784  ;;  %2198 = vmatprep.subr.bf16.mxu0 %v2658_v0  ;;  %2028 = vmatprep.mubr.msk.f32.mxu0 %vm2659_vm0, %v2660_v1  ;;  %v2968_v4 = vld [vmem:[%s3336_s3 + $0x20] sm:$0xff]  ;;  %v2400_v5 = vpack.i.bf16 %v2963_v3, %v2958_v2  ;;  %v2199_v6 = vpack.c.bf16 %v2963_v3, %v2958_v2  ;;  %v2977_v7 = vld [vmem:[%s3336_s3 + $0x30] sm:$0xff]  ;;  %vm450_vm1 = vcmask 261120   ;;  %s3392_s9 = sld [smem:[#allocation24_spill]] }
  0x98   : > { %2224 = vmatprep.subr.bf16.mxu1 %v2658_v0  ;;  %2072 = vmatprep.mubr.msk.f32.mxu1 %vm2659_vm0, %v2660_v1  ;;  %v2982_v8 = vld [vmem:[%s3340_s7 + $0x10] sm:$0xff]  ;;  %v2989_v9 = vld [vmem:[%s3340_s7] sm:$0xff]  ;;  %v2202_v10 = vpack.c.bf16 %v2977_v7, %v2968_v4  ;;  %v2998_v11 = vld [vmem:[%s3340_s7 + $0x18] sm:$0xff]  ;;  %s2663_s4 = smov 64   ;;  %v2405_v58 = vpack.i.bf16 %v2977_v7, %v2968_v4  ;;  %s3396_s18 = sld [smem:[#allocation23_spill]] }
  0x99   : > { %532 = vrot.lane.b32.xlu1 %v2982_v8, %s2661_s16  ;;  %2200 = vmatpush3.bf16.msra.mxu0 %v2199_v6  ;;  %v3004_v12 = vld [vmem:[%s3340_s7 + $0x8] sm:$0xff]  ;;  %vm3037_vm2 = vmpackc.low %vm450_vm1, %vm450_vm1  ;;  %v2222_v2 = vpack.c.bf16 %v2998_v11, %v2982_v8  ;;  %s3397_s13 = sld [smem:[#allocation19_spill]]  ;;  %s1935_s27 = sshll.u32 %s2806_s28, 7 }
  0x9a   : > { %528 = vrot.lane.b32.xlu0 %v2989_v9, %s2661_s16  ;;  %2201 = vmatprep.subr.bf16.mxu0 %v2658_v0  ;;  %v3010_v13 = vld [vmem:[%s367_s15] sm:$0xff]  ;;  %s2662_s15 = smov 96   ;;  %v2219_v62 = vpack.c.bf16 %v3004_v12, %v2989_v9  ;;  %s1761_s5 = scalar_lea.sflag [#allocation4], %s2927_s29 }
  0x9b   : > { %s2665_s28 = smov [#allocation10]  }
  0x9d   : > { %534 = vrot.lane.b32.xlu1 %v2998_v11, %s2661_s16  ;;  %2203 = vmatpush3.bf16.msra.mxu0 %v2202_v10  ;;  %v3022_v16 = vld [vmem:[%s3392_s9] ss:$0 sm:$0xff] }
  0x9e   : > { %530 = vrot.lane.b32.xlu0 %v3004_v12, %s2661_s16  ;;  %2204 = vmatprep.subr.bf16.mxu0 %v2658_v0 }
  0x9f   : > { %p3399_p9 = scmp.ne.s32.totalorder %s3397_s13, 0 }
  0xa0   : > { %2029 = vmatmul.mubr.msk.f32.vlgmr.msra.gmra.mrb[0].mxu0 %vm450_vm1, %v3010_v13 }
  0xa1   : > { %2039 = vmatprep.mubr.msk.f32.mxu0 %vm2659_vm0, %v2660_v1 }
 0x10b   : > { %v533_v14 = vpop.permute.xlu1 %532 }
 0x10c   : > { %v529_v15 = vpop.permute.xlu0 %528 }
 0x10f   : > { %v535_v17 = vpop.permute.xlu1 %534 }
 0x110   : > { %v531_v19 = vpop.permute.xlu0 %530 }
 0x173   : > { %v520_v18 = vpop.f32.mrb[0].mxu0 }
 0x174   : > { %v521_v20 = vadd.f32 %v520_v18, %v3022_v16  ;;  %v2030_v21 = vpop.f32.mrb[1].mxu0 }
 0x176   : > { %v542_v22 = vmul.f32 %v533_v14, %v521_v20  ;;  %v543_v23 = vmul.f32 %v535_v17, %v521_v20  ;;  %v540_v24 = vmul.f32 %v529_v15, %v521_v20  ;;  %v541_v25 = vmul.f32 %v531_v19, %v521_v20 }
 0x178   : > { %v2385_v26 = vpack.i.bf16 %v543_v23, %v542_v22  ;;  %v2380_v27 = vpack.i.bf16 %v541_v25, %v540_v24 }
 0x17a   : > { %2386 = vrot.lane.b32.xlu1 %v2385_v26, %s2662_s15  ;;  %2381 = vrot.lane.b32.xlu0 %v2380_v27, %s2662_s15 }
 0x17e   : > { %546 = vrot.lane.b32.xlu1 %v3004_v12, %s2663_s4  ;;  %544 = vrot.lane.b32.xlu0 %v2989_v9, %s2663_s4 }
 0x182   : > { %550 = vrot.lane.b32.xlu1 %v2998_v11, %s2663_s4  ;;  %548 = vrot.lane.b32.xlu0 %v2982_v8, %s2663_s4 }
 0x1ec   : > { %v2387_v28 = vpop.permute.xlu1 %2386  ;;  %v2382_v29 = vpop.permute.xlu0 %2381 }
 0x1ed   : > { %v2384_v30 = vunpack.i.h.bf16 %v2382_v29  ;;  %v2383_v31 = vunpack.i.l.bf16 %v2382_v29  ;;  %v2389_v38 = vunpack.i.h.bf16 %v2387_v28  ;;  %v2388_v39 = vunpack.i.l.bf16 %v2387_v28  ;;  %v938_v28 = vld [vmem:[%s3336_s3 + $0x28] sm:$0xff]  ;;  %v939_v29 = vld [vmem:[%s3336_s3 + $0x38] sm:$0xff] }
 0x1ef   : > { %v2205_v33 = vpack.c.bf16 %v2384_v30, %v2383_v31  ;;  %v2209_v45 = vpack.c.bf16 %v2389_v38, %v2388_v39  ;;  %v3089_v30 = vpack.i.bf16 %v939_v29, %v938_v28 }
 0x1f0   : > { %v547_v34 = vpop.permute.xlu1 %546  ;;  %v545_v35 = vpop.permute.xlu0 %544 }
 0x1f1   : > { %v557_v36 = vmul.f32 %v547_v34, %v521_v20  ;;  %v556_v37 = vmul.f32 %v545_v35, %v521_v20  ;;  %2207 = vmatpush3.bf16.xpose.msk.msra.mxu0 %vm3037_vm2, %v2205_v33 }
 0x1f2   : > { %2208 = vmatprep.subr.bf16.mxu0 %v2658_v0 }
 0x1f3   : > { %v2390_v40 = vpack.i.bf16 %v557_v36, %v556_v37  ;;  %v936_v36 = vld [vmem:[%s3336_s3 + $0x8] sm:$0xff]  ;;  %v937_v37 = vld [vmem:[%s3336_s3 + $0x18] sm:$0xff] }
 0x1f4   : > { %v551_v41 = vpop.permute.xlu1 %550  ;;  %v549_v42 = vpop.permute.xlu0 %548  ;;  %v3100_v38 = vpack.i.bf16 %v937_v37, %v936_v36  ;;  %v2231_v39 = vpack.c.bf16 %v937_v37, %v936_v36 }
 0x1f5   : > { %v559_v43 = vmul.f32 %v551_v41, %v521_v20  ;;  %v558_v44 = vmul.f32 %v549_v42, %v521_v20  ;;  %2391 = vrot.lane.b32.xlu1 %v2390_v40, %s2663_s4  ;;  %v2234_v40 = vpack.c.bf16 %v939_v29, %v938_v28  ;;  %v3109_v41 = vld [vmem:[%s3392_s9 + $0x8] ss:$0 sm:$0xff] }
 0x1f7   : > { %v2395_v46 = vpack.i.bf16 %v559_v43, %v558_v44 }
 0x1f9   : > { %2396 = vrot.lane.b32.xlu1 %v2395_v46, %s2663_s4  ;;  %2211 = vmatpush3.bf16.xpose.msk.msra.mxu0 %vm3037_vm2, %v2209_v45 }
 0x1fa   : > { %2212 = vmatprep.subr.bf16.mxu0 %v2658_v0 }
 0x1fd   : > { %2401 = vrot.lane.b32.xlu1 %v2400_v5, %s2661_s16 }
 0x200   : > { %2040 = vmatmul.mubr.msk.f32.vlgmr.msra.gmra.mrb[2].mxu0 %vm450_vm1, %v521_v20 }
 0x201   : > { %2050 = vmatprep.mubr.msk.f32.mxu0 %vm2659_vm0, %v2660_v1  ;;  %2406 = vrot.lane.b32.xlu1 %v2405_v58, %s2661_s16 }
 0x205   : > { %841 = vrot.lane.b32.xlu1 %v3022_v16, %s2661_s16 }
 0x267   : > { %v2392_v47 = vpop.permute.xlu1 %2391 }
 0x268   : > { %v2394_v48 = vunpack.i.h.bf16 %v2392_v47  ;;  %v2393_v49 = vunpack.i.l.bf16 %v2392_v47 }
 0x26a   : > { %v2213_v50 = vpack.c.bf16 %v2394_v48, %v2393_v49 }
 0x26b   : > { %v2397_v51 = vpop.permute.xlu1 %2396 }
 0x26c   : > { %v2399_v52 = vunpack.i.h.bf16 %v2397_v51  ;;  %v2398_v53 = vunpack.i.l.bf16 %v2397_v51  ;;  %2214 = vmatpush3.bf16.msra.mxu0 %v2213_v50 }
 0x26d   : > { %2215 = vmatprep.subr.bf16.mxu0 %v2658_v0 }
 0x26e   : > { %v2216_v54 = vpack.c.bf16 %v2399_v52, %v2398_v53  ;;  %v435_v53 = vld [vmem:[%s376_s26] sm:$0xff]  ;;  %s433_s26 = scalar_lea.vmem [#allocation10], %s2930_s12  ;;  %s2580_s12 = sshll.u32 %s2665_s28, 4  ;;  %s2581_s12 = int_to_ptr.vmem [resolvable:$false] %s2580_s12 }
 0x26f   : > { %v2402_v3 = vpop.permute.xlu1 %2401  ;;  %s2582_s19 = scalar_lea.vmem %s2581_s12, 256 }
 0x270   : > { %2217 = vmatpush3.bf16.msra.mxu0 %v2216_v54  ;;  %v2404_v4 = vunpack.i.h.bf16 %v2402_v3  ;;  %v2403_v5 = vunpack.i.l.bf16 %v2402_v3 }
 0x271   : > { %2218 = vmatprep.subr.bf16.mxu0 %v2658_v0 }
 0x272   : > { %v2225_v6 = vpack.c.bf16 %v2404_v4, %v2403_v5 }
 0x273   : > { %v2407_v7 = vpop.permute.xlu1 %2406 }
 0x274   : > { %v2409_v8 = vunpack.i.h.bf16 %v2407_v7  ;;  %v2408_v9 = vunpack.i.l.bf16 %v2407_v7  ;;  %2226 = vmatpush3.bf16.msra.mxu1 %v2225_v6  ;;  %v443_v7 = vld [vmem:[#allocation8 + $0x10] sm:$0xff] }
 0x275   : > { %2227 = vmatprep.subr.bf16.mxu1 %v2658_v0 }
 0x276   : > { %v2228_v10 = vpack.c.bf16 %v2409_v8, %v2408_v9  ;;  %v444_v8 = vld [vmem:[#allocation8 + $0x18] sm:$0xff] }
 0x277   : > { %v842_v22 = vpop.permute.xlu1 %841 }
 0x278   : > { %2229 = vmatpush3.bf16.msra.mxu1 %v2228_v10 }
 0x279   : > { %2236 = vmatprep.subr.bf16.mxu1 %v2658_v0 }
 0x2d3   : > { %v649_v55 = vpop.f32.mrb[2].mxu0 }
 0x2d4   : > { %v2041_v56 = vpop.f32.mrb[3].mxu0  ;;  %v653_v57 = vsel %vm450_vm1, %v649_v55, -inf }
 0x2d5   : > { %654 = vmax.xlane.f32.xlu0 %v653_v57  ;;  %v934_v57 = vld [vmem:[%s3392_s9 + $0x3] ss:$0 sm:$0xff] }
 0x362   : > { %v655_v59 = vpop.xlane.xlu0 %654 }
 0x363   : > { %v656_v60 = vsub.f32 %v649_v55, %v655_v59  ;;  %v932_v55 = vld [vmem:[%s3392_s9 + $0x2] ss:$0 sm:$0xff] }
 0x365   : > { %v657_v61 = vmul.f32 1.442695, %v656_v60 }
 0x367   : > { %2440 = vpow2.f32 %v657_v61  ;;  %v3138_v61 = vld [vmem:[#allocation8] sm:$0xff] }
 0x371   : > { %v2441_v63 = vpop.eup %2440 }
 0x372   : > { %2051 = vmatmul.mubr.msk.f32.vlgmr.msra.gmra.mrb[4].mxu0 %vm450_vm1, %v2441_v63 }
 0x373   : > { %2220 = vmatpush3.bf16.msra.mxu0 %v2219_v62  ;;  %2061 = vmatprep.mubr.msk.f32.mxu0 %vm2659_vm0, %v2660_v1  ;;  %v3140_v62 = vld [vmem:[#allocation8 + $0x8] sm:$0xff] }
 0x374   : > { %2221 = vmatprep.subr.bf16.mxu0 %v2658_v0 }
 0x377   : > { %2223 = vmatpush3.bf16.msra.mxu0 %v2222_v2 }
 0x378   : > { %2230 = vmatprep.subr.bf16.mxu0 %v2658_v0 }
 0x37a   : > { %2062 = vmatmul.mubr.msk.f32.vlgmr.msra.gmra.mrb[6].mxu0 %vm450_vm1, %v2441_v63 }
 0x37b   : > { %2083 = vmatprep.mubr.msk.f32.mxu0 %vm2659_vm0, %v2660_v1  ;;  %2232 = vmatpush3.bf16.msra.mxu0 %v2231_v39 }
 0x37c   : > { %2233 = vmatprep.subr.bf16.mxu0 %v2658_v0 }
 0x37f   : > { %2235 = vmatpush3.bf16.msra.mxu0 %v2234_v40 }
 0x380   : > { %2242 = vmatprep.subr.bf16.mxu0 %v2658_v0 }
 0x445   : > { %v744_v11 = vpop.f32.mrb[4].mxu0 }
 0x446   : > { %v2052_v12 = vpop.f32.mrb[5].mxu0 }
 0x44d   : > { %v814_v14 = vpop.f32.mrb[6].mxu0 }
 0x44e   : > { %v818_v15 = vmax.f32 %v814_v14, 1e-30  ;;  %v2063_v16 = vpop.f32.mrb[7].mxu0 }
 0x450   : > { %2442 = vrcp.f32 %v818_v15 }
 0x45a   : > { %v2443_v17 = vpop.eup %2442 }
 0x45b   : > { %v820_v18 = vmul.f32 %v2443_v17, %v814_v14 }
 0x45d   : > { %v821_v19 = vsub.f32 2.0, %v820_v18 }
 0x45f   : > { %v822_v20 = vmul.f32 %v2443_v17, %v821_v19 }
 0x461   : > { %v823_v21 = vmul.f32 %v822_v20, %v744_v11 }
 0x463   : > { %2073 = vmatmul.mubr.msk.f32.vlgmr.msra.gmra.mrb[0].mxu1 %vm450_vm1, %v823_v21 }
 0x464   : > { %2094 = vmatprep.mubr.msk.f32.mxu1 %vm2659_vm0, %v2660_v1 }
 0x536   : > { %v913_v23 = vpop.f32.mrb[0].mxu1 }
 0x537   : > { %v914_v24 = vadd.f32 %v913_v23, %v842_v22  ;;  %v2074_v25 = vpop.f32.mrb[1].mxu1  ;;  %v436_v23 = vld [vmem:[%s385_s21] sm:$0xff]  ;;  %s1774_s21 = sshll.u32 %s433_s26, 4  ;;  %s3290_s21 = int_to_ptr.vmem [resolvable:$true] %s1774_s21 }
 0x538   : > { %s2576_s30 = scalar_lea.vmem %s3290_s21, 128  ;;  %p2583_p3 = scmp.lt.s32.totalorder %s3290_s21, %s2581_s12 }
 0x539   : > { %v917_v26 = vadd.f32 %v914_v24, %v3010_v13  ;;  %p2577_p4 = scmp.ne.s32.totalorder %s3290_s21, %s2576_s30  ;;  %p2584_p5 = scmp.lt.s32.totalorder %s2582_s19, %s2576_s30 }
 0x53b   : > { %v918_v27 = vsel %vm450_vm1, %v917_v26, 0.0  ;;  %p2578_p12 = pnand %p2577_p4, %p3399_p9  ;;  %p2585_p7 = por %p2584_p5, %p2583_p3 }
 0x53c   : > { %919 = vadd.xlane.f32.xlu1 %v918_v27 }
 0x53d   : > { %p2579_p6 = pneg %p2578_p12 }
 0x53f   : > { %p2586_p11 = pnand %p2585_p7, %p2579_p6 }
 0x54d   : > { %2416 = vrot.lane.b32.xlu1 %v3089_v30, %s2662_s15 }
 0x551   : > { %1119 = vrot.lane.b32.xlu1 %v3109_v41, %s2663_s4 }
 0x555   : > { %2431 = vrot.lane.b32.xlu1 %v3100_v38, %s2661_s16 }
 0x559   : > { %2436 = vrot.lane.b32.xlu1 %v3089_v30, %s2661_s16 }
 0x55d   : > { %1455 = vrot.lane.b32.xlu1 %v3109_v41, %s2661_s16  ;;  %s3395_s16 = sld [smem:[#allocation22_spill]] }
 0x5c9   : > { %v920_v31 = vpop.xlane.xlu1 %919 }
 0x5ca   : > { %v922_v33 = vmul.f32 0.03125, %v920_v31 }
 0x5cc   : > { %v923_v34 = vsub.f32 %v917_v26, %v922_v33 }
 0x5cd   : > { %v2417_v44 = vpop.permute.xlu1 %2416 }
 0x5ce   : > { %v924_v13 = vmul.f32 %v923_v34, %v923_v34  ;;  %v2419_v47 = vunpack.i.h.bf16 %v2417_v44  ;;  %v2418_v50 = vunpack.i.l.bf16 %v2417_v44 }
 0x5d0   : > { %v925_v35 = vsel %vm450_vm1, %v924_v13, 0.0  ;;  %v2240_v52 = vpack.c.bf16 %v2419_v47, %v2418_v50 }
 0x5d1   : > { %926 = vadd.xlane.f32.xlu0 %v925_v35  ;;  %v1120_v29 = vpop.permute.xlu1 %1119 }
 0x5e7   : > { %2411 = vrot.lane.b32.xlu0 %v3100_v38, %s2662_s15 }
 0x5eb   : > { %1031 = vrot.lane.b32.xlu0 %v3109_v41, %s2662_s15 }
 0x5ef   : > { %2421 = vrot.lane.b32.xlu0 %v3100_v38, %s2663_s4 }
 0x5f3   : > { %2426 = vrot.lane.b32.xlu0 %v3089_v30, %s2663_s4  ;;  %v2432_v30 = vpop.permute.xlu1 %2431  ;;  %s3398_s4 = sld [smem:[#allocation25_spill]] }
 0x5f4   : > { %v2434_v38 = vunpack.i.h.bf16 %v2432_v30 }
 0x5f7   : > { %v2437_v47 = vpop.permute.xlu1 %2436 }
 0x5f9   : > { %s3288_s6 = scalar_lea.hbm %s3398_s4, %s1935_s27 }
 0x65e   : > { %v927_v42 = vpop.xlane.xlu0 %926 }
 0x65f   : > { %v928_v43 = vmul.f32 0.03125, %v927_v42 }
 0x661   : > { %v929_v45 = vadd.f32 1e-05, %v928_v43  ;;  %v2263_v43 = vpack.c.bf16 %v3140_v62, %v3138_v61 }
 0x662   : > { %v2412_v46 = vpop.permute.xlu0 %2411 }
 0x663   : > { %2444 = vrsqrt.f32 %v929_v45  ;;  %v2414_v48 = vunpack.i.h.bf16 %v2412_v46  ;;  %v2413_v49 = vunpack.i.l.bf16 %v2412_v46  ;;  %v2266_v45 = vpack.c.bf16 %v444_v8, %v443_v7 }
 0x665   : > { %v2237_v51 = vpack.c.bf16 %v2414_v48, %v2413_v49  ;;  %v2439_v48 = vunpack.i.h.bf16 %v2437_v47  ;;  %v2438_v49 = vunpack.i.l.bf16 %v2437_v47 }
 0x666   : > { %v1032_v60 = vpop.permute.xlu0 %1031 }
 0x667   : > { %2238 = vmatpush3.bf16.msra.mxu1 %v2237_v51  ;;  %v2272_v50 = vpack.c.bf16 %v2439_v48, %v2438_v49  ;;  %v1553_v48 = vld [vmem:[%s3392_s9 + $0x1] ss:$0 sm:$0xff] }
 0x668   : > { %2239 = vmatprep.subr.bf16.mxu1 %v2658_v0 }
 0x66a   : > { %v2422_v14 = vpop.permute.xlu0 %2421 }
 0x66b   : > { %2241 = vmatpush3.bf16.msra.mxu1 %v2240_v52  ;;  %v2424_v15 = vunpack.i.h.bf16 %v2422_v14  ;;  %v2423_v16 = vunpack.i.l.bf16 %v2422_v14  ;;  %v1552_v14 = vld [vmem:[%s3395_s16 + $0x18] sm:$0xff] }
 0x66c   : > { %2248 = vmatprep.subr.bf16.mxu1 %v2658_v0 }
 0x66d   : > { %v2445_v54 = vpop.eup %2444  ;;  %v2243_v18 = vpack.c.bf16 %v2424_v15, %v2423_v16 }
 0x66e   : > { %v931_v56 = vmul.f32 %v2445_v54, %v923_v34  ;;  %2095 = vmatmul.mubr.msk.f32.vlgmr.msra.gmra.mrb[2].mxu1 %vm450_vm1, %v435_v53  ;;  %v2427_v19 = vpop.permute.xlu0 %2426 }
 0x66f   : > { %2116 = vmatprep.mubr.msk.f32.mxu1 %vm2659_vm0, %v2660_v1  ;;  %v2429_v20 = vunpack.i.h.bf16 %v2427_v19  ;;  %v2428_v21 = vunpack.i.l.bf16 %v2427_v19 }
 0x670   : > { %v933_v58 = vmul.f32 %v932_v55, %v931_v56 }
 0x671   : > { %v2246_v22 = vpack.c.bf16 %v2429_v20, %v2428_v21  ;;  %v1545_v20 = vld [vmem:[%s3392_s9 + $0x4] ss:$0 sm:$0xff] }
 0x672   : > { %v3128_v59 = vadd.f32 %v934_v57, %v933_v58 }
 0x674   : > { %2084 = vmatmul.mubr.msk.f32.vlgmr.msra.gmra.mrb[8].mxu0 %vm450_vm1, %v3128_v59 }
 0x675   : > { %2105 = vmatprep.mubr.msk.f32.mxu0 %vm2659_vm0, %v2660_v1  ;;  %2244 = vmatpush3.bf16.msra.mxu0 %v2243_v18 }
 0x676   : > { %2245 = vmatprep.subr.bf16.mxu0 %v2658_v0 }
 0x679   : > { %2247 = vmatpush3.bf16.msra.mxu0 %v2246_v22  ;;  %v1547_v22 = vld [vmem:[%s3392_s9 + $0x5] ss:$0 sm:$0xff] }
 0x67a   : > { %2256 = vmatprep.subr.bf16.mxu0 %v2658_v0 }
 0x67c   : > { %2106 = vmatmul.mubr.msk.f32.vlgmr.msra.gmra.mrb[10].mxu0 %vm450_vm1, %v436_v23 }
 0x67d   : > { %2127 = vmatprep.mubr.msk.f32.mxu0 %vm2659_vm0, %v2660_v1 }
 0x741   : > { %v1103_v63 = vpop.f32.mrb[2].mxu1 }
 0x742   : > { %v1104_v2 = vadd.f32 %v1103_v63, %v1032_v60  ;;  %v2096_v3 = vpop.f32.mrb[3].mxu1 }
 0x744   : > { %v1195_v4 = vmul.f32 %v1104_v2, %v3138_v61  ;;  %v1196_v5 = vmul.f32 %v1104_v2, %v3140_v62  ;;  %v1197_v11 = vmul.f32 %v1104_v2, %v443_v7  ;;  %v1198_v12 = vmul.f32 %v1104_v2, %v444_v8 }
 0x746   : > { %v2249_v6 = vpack.c.bf16 %v1196_v5, %v1195_v4  ;;  %v2253_v17 = vpack.c.bf16 %v1198_v12, %v1197_v11  ;;  %v1550_v11 = vld [vmem:[%s3395_s16 + $0x8] sm:$0xff] }
 0x747   : > { %v1010_v9 = vpop.f32.mrb[8].mxu0 }
 0x748   : > { %v2085_v10 = vpop.f32.mrb[9].mxu0  ;;  %2251 = vmatpush3.bf16.xpose.msk.msra.mxu1 %vm3037_vm2, %v2249_v6  ;;  %v1011_v24 = vadd.f32 %v1010_v9, %v3109_v41  ;;  %v2433_v41 = vunpack.i.l.bf16 %v2432_v30  ;;  %v1667_v30 = vld [vmem:[%s3396_s18 + $0x68] sm:$0xff] }
 0x749   : > { %2252 = vmatprep.subr.bf16.mxu1 %v2658_v0 }
 0x74a   : > { %v2269_v46 = vpack.c.bf16 %v2434_v38, %v2433_v41  ;;  %v1668_v41 = vld [vmem:[%s3396_s18 + $0x70] sm:$0xff] }
 0x74f   : > { %v1191_v25 = vpop.f32.mrb[10].mxu0 }
 0x750   : > { %2255 = vmatpush3.bf16.xpose.msk.msra.mxu1 %vm3037_vm2, %v2253_v17  ;;  %v2107_v28 = vpop.f32.mrb[11].mxu0  ;;  %v1192_v31 = vadd.f32 %v1191_v25, %v1120_v29  ;;  %v1655_v25 = vld [vmem:[%s3396_s18 + $0x8] sm:$0xff] }
 0x751   : > { %2268 = vmatprep.subr.bf16.mxu1 %v2658_v0  ;;  %v1657_v28 = vld [vmem:[%s3396_s18 + $0x18] sm:$0xff] }
 0x752   : > { %v1199_v33 = vmul.f32 %v1192_v31, %v3138_v61  ;;  %v1200_v34 = vmul.f32 %v1192_v31, %v3140_v62  ;;  %v1201_v13 = vmul.f32 %v1192_v31, %v443_v7  ;;  %v1202_v35 = vmul.f32 %v1192_v31, %v444_v8  ;;  %v1456_v62 = vpop.permute.xlu1 %1455  ;;  %v1658_v31 = vld [vmem:[%s3396_s18 + $0x20] sm:$0xff] }
 0x754   : > { %v2257_v36 = vpack.c.bf16 %v1200_v34, %v1199_v33  ;;  %v2260_v37 = vpack.c.bf16 %v1202_v35, %v1201_v13  ;;  %v1659_v33 = vld [vmem:[%s3396_s18 + $0x28] sm:$0xff]  ;;  %v1660_v13 = vld [vmem:[%s3396_s18 + $0x30] sm:$0xff]  ;;  %v1661_v35 = vld [vmem:[%s3396_s18 + $0x38] sm:$0xff] }
 0x755   : > { %v2287_v34 = vpack.c.bf16 %v1659_v33, %v1658_v31  ;;  %v1757_v33 = vld [vmem:[%s3392_s9 + $0x7] ss:$0 sm:$0xff] }
 0x756   : > { %2258 = vmatpush3.bf16.msra.mxu0 %v2257_v36  ;;  %v2290_v36 = vpack.c.bf16 %v1661_v35, %v1660_v13 }
 0x757   : > { %2117 = vmatmul.mubr.msk.f32.vlgmr.msra.gmra.mrb[4].mxu1 %vm450_vm1, %v1011_v24  ;;  %2259 = vmatprep.subr.bf16.mxu0 %v2658_v0 }
 0x758   : > { %2149 = vmatprep.mubr.msk.f32.mxu1 %vm2659_vm0, %v2660_v1  ;;  %2270 = vmatpush3.bf16.msra.mxu1 %v2269_v46  ;;  %v1669_v46 = vld [vmem:[%s3396_s18 + $0x78] sm:$0xff] }
 0x759   : > { %2271 = vmatprep.subr.bf16.mxu1 %v2658_v0  ;;  %v2302_v47 = vpack.c.bf16 %v1669_v46, %v1668_v41 }
 0x75a   : > { %2261 = vmatpush3.bf16.msra.mxu0 %v2260_v37  ;;  %v1662_v37 = vld [vmem:[%s3396_s18 + $0x40] sm:$0xff] }
 0x75b   : > { %2262 = vmatprep.subr.bf16.mxu0 %v2658_v0 }
 0x75c   : > { %2273 = vmatpush3.bf16.msra.mxu1 %v2272_v50 }
 0x75d   : > { %2280 = vmatprep.subr.bf16.mxu1 %v2658_v0 }
 0x82a   : > { %v1284_v32 = vpop.f32.mrb[4].mxu1 }
 0x82b   : > { %v2118_v26 = vpop.f32.mrb[5].mxu1  ;;  %v1288_v27 = vsel %vm450_vm1, %v1284_v32, -inf }
 0x82c   : > { %1289 = vmax.xlane.f32.xlu0 %v1288_v27  ;;  %v1656_v27 = vld [vmem:[%s3396_s18 + $0x10] sm:$0xff] }
 0x82d   : > { %v2284_v29 = vpack.c.bf16 %v1657_v28, %v1656_v27 }
 0x8b9   : > { %v1290_v39 = vpop.xlane.xlu0 %1289 }
 0x8ba   : > { %v1291_v40 = vsub.f32 %v1284_v32, %v1290_v39  ;;  %v1654_v32 = vld [vmem:[%s3396_s18] sm:$0xff]  ;;  %v1663_v39 = vld [vmem:[%s3396_s18 + $0x48] sm:$0xff] }
 0x8bb   : > { %v2281_v26 = vpack.c.bf16 %v1655_v25, %v1654_v32 }
 0x8bc   : > { %v1292_v42 = vmul.f32 1.442695, %v1291_v40  ;;  %v2293_v40 = vpack.c.bf16 %v1663_v39, %v1662_v37 }
 0x8be   : > { %2446 = vpow2.f32 %v1292_v42  ;;  %v1664_v42 = vld [vmem:[%s3396_s18 + $0x50] sm:$0xff] }
 0x8c8   : > { %v2447_v44 = vpop.eup %2446 }
 0x8c9   : > { %2128 = vmatmul.mubr.msk.f32.vlgmr.msra.gmra.mrb[12].mxu0 %vm450_vm1, %v2447_v44 }
 0x8ca   : > { %2264 = vmatpush3.bf16.msra.mxu0 %v2263_v43  ;;  %2138 = vmatprep.mubr.msk.f32.mxu0 %vm2659_vm0, %v2660_v1  ;;  %v1665_v43 = vld [vmem:[%s3396_s18 + $0x58] sm:$0xff] }
 0x8cb   : > { %2265 = vmatprep.subr.bf16.mxu0 %v2658_v0 }
 0x8ce   : > { %2267 = vmatpush3.bf16.msra.mxu0 %v2266_v45  ;;  %v1666_v45 = vld [vmem:[%s3396_s18 + $0x60] sm:$0xff] }
 0x8cf   : > { %2274 = vmatprep.subr.bf16.mxu0 %v2658_v0  ;;  %v2299_v38 = vpack.c.bf16 %v1667_v30, %v1666_v45 }
 0x8d1   : > { %2139 = vmatmul.mubr.msk.f32.vlgmr.msra.gmra.mrb[14].mxu0 %vm450_vm1, %v2447_v44  ;;  %v2296_v44 = vpack.c.bf16 %v1665_v43, %v1664_v42 }
 0x8d2   : > { %2160 = vmatprep.mubr.msk.f32.mxu0 %vm2659_vm0, %v2660_v1 }
 0x99c   : > { %v1363_v51 = vpop.f32.mrb[12].mxu0 }
 0x99d   : > { %v2129_v52 = vpop.f32.mrb[13].mxu0 }
 0x9a4   : > { %v1433_v53 = vpop.f32.mrb[14].mxu0 }
 0x9a5   : > { %v1437_v54 = vmax.f32 %v1433_v53, 1e-30  ;;  %v2140_v55 = vpop.f32.mrb[15].mxu0 }
 0x9a7   : > { %2448 = vrcp.f32 %v1437_v54 }
 0x9b1   : > { %v2449_v56 = vpop.eup %2448 }
 0x9b2   : > { %v1439_v57 = vmul.f32 %v2449_v56, %v1433_v53 }
 0x9b4   : > { %v1440_v58 = vsub.f32 2.0, %v1439_v57 }
 0x9b6   : > { %v1441_v60 = vmul.f32 %v2449_v56, %v1440_v58 }
 0x9b8   : > { %v1442_v61 = vmul.f32 %v1441_v60, %v1363_v51 }
 0x9ba   : > { %2150 = vmatmul.mubr.msk.f32.vlgmr.msra.gmra.mrb[6].mxu1 %vm450_vm1, %v1442_v61 }
 0x9bb   : > { %2195 = vmatprep.mubr.msk.f32.mxu1 %vm2659_vm0, %v2660_v1  ;;  %v1549_v1 = vld [vmem:[%s3395_s16] sm:$0xff]  ;;  %2282 = vmatpush3.bf16.msra.mxu1 %v2281_v26 }
 0x9bc   : > { %v2275_v12 = vpack.c.bf16 %v1550_v11, %v1549_v1  ;;  %2283 = vmatprep.subr.bf16.mxu1 %v2658_v0 }
 0x9be   : > { %2276 = vmatpush3.bf16.msra.mxu0 %v2275_v12 }
 0x9bf   : > { %2277 = vmatprep.subr.bf16.mxu0 %v2658_v0  ;;  %2285 = vmatpush3.bf16.msra.mxu1 %v2284_v29 }
 0x9c0   : > { %2286 = vmatprep.subr.bf16.mxu1 %v2658_v0 }
 0x9c3   : > { %2288 = vmatpush3.bf16.msra.mxu1 %v2287_v34 }
 0x9c4   : > { %2289 = vmatprep.subr.bf16.mxu1 %v2658_v0 }
 0x9c7   : > { %2291 = vmatpush3.bf16.msra.mxu1 %v2290_v36 }
 0x9c8   : > { %2292 = vmatprep.subr.bf16.mxu1 %v2658_v0 }
 0x9cb   : > { %2294 = vmatpush3.bf16.msra.mxu1 %v2293_v40 }
 0x9cc   : > { %2295 = vmatprep.subr.bf16.mxu1 %v2658_v0 }
 0x9cf   : > { %2297 = vmatpush3.bf16.msra.mxu1 %v2296_v44 }
 0x9d0   : > { %2298 = vmatprep.subr.bf16.mxu1 %v2658_v0 }
 0x9d3   : > { %2300 = vmatpush3.bf16.msra.mxu1 %v2299_v38 }
 0x9d4   : > { %2301 = vmatprep.subr.bf16.mxu1 %v2658_v0 }
 0x9d7   : > { %2303 = vmatpush3.bf16.msra.mxu1 %v2302_v47 }
 0xa8d   : > { %v1527_v63 = vpop.f32.mrb[6].mxu1 }
 0xa8e   : > { %v1528_v2 = vadd.f32 %v1527_v63, %v1456_v62  ;;  %v2151_v3 = vpop.f32.mrb[7].mxu1 }
 0xa90   : > { %v1531_v4 = vadd.f32 %v1528_v2, %v3128_v59  ;;  %v1551_v59 = vld [vmem:[%s3395_s16 + $0x10] sm:$0xff] }
 0xa91   : > { %v2278_v15 = vpack.c.bf16 %v1552_v14, %v1551_v59 }
 0xa92   : > { %v1532_v5 = vsel %vm450_vm1, %v1531_v4, 0.0 }
 0xa93   : > { %1533 = vadd.xlane.f32.xlu1 %v1532_v5  ;;  %2279 = vmatpush3.bf16.msra.mxu0 %v2278_v15  ;;  %v1670_v15 = vld [vmem:[%s3392_s9 + $0x10] ss:$0 sm:$0xff] }
 0xb20   : > { %v1534_v6 = vpop.xlane.xlu1 %1533 }
 0xb21   : > { %v1535_v7 = vmul.f32 0.03125, %v1534_v6 }
 0xb23   : > { %v1536_v8 = vsub.f32 %v1531_v4, %v1535_v7 }
 0xb25   : > { %v1537_v9 = vmul.f32 %v1536_v8, %v1536_v8 }
 0xb27   : > { %v1538_v10 = vsel %vm450_vm1, %v1537_v9, 0.0 }
 0xb28   : > { %1539 = vadd.xlane.f32.xlu0 %v1538_v10  ;;  %v2664_v10 = vmov -1.0  }
 0xbb5   : > { %v1540_v16 = vpop.xlane.xlu0 %1539 }
 0xbb6   : > { %v1541_v17 = vmul.f32 0.03125, %v1540_v16 }
 0xbb8   : > { %v1542_v18 = vadd.f32 1e-05, %v1541_v17 }
 0xbba   : > { %2450 = vrsqrt.f32 %v1542_v18 }
 0xbc4   : > { %v2451_v19 = vpop.eup %2450 }
 0xbc5   : > { %v1544_v21 = vmul.f32 %v2451_v19, %v1536_v8 }
 0xbc7   : > { %v1546_v23 = vmul.f32 %v1545_v20, %v1544_v21 }
 0xbc9   : > { %v3209_v24 = vadd.f32 %v1547_v22, %v1546_v23 }
 0xbcb   : > { %2161 = vmatmul.mubr.msk.f32.vlgmr.msra.gmra.mrb[16].mxu0 %vm450_vm1, %v3209_v24 }
 0xc9e   : > { %v1623_v49 = vpop.f32.mrb[16].mxu0 }
 0xc9f   : > { %v1624_v50 = vadd.f32 %v1623_v49, %v1553_v48  ;;  %v2162_v51 = vpop.f32.mrb[17].mxu0 }
 0xca1   : > { %v1628_v52 = vmul.f32 0.70710677, %v1624_v50  ;;  %v1627_v12 = vmul.f32 0.5, %v1624_v50 }
 0xca3   : > { %v1631_v53 = vand.u32 2147483647, %v1628_v52  ;;  %vm1629_vm3 = vcmp.ge.f32.partialorder %v1628_v52, 0.0 }
 0xca4   : > { %v1630_v1 = vsel %vm1629_vm3, 1.0, %v2664_v10 }
 0xca5   : > { %v1632_v0 = vmul.f32 0.3275911, %v1631_v53  ;;  %v1645_v55 = vsub.f32 0.0, %v1631_v53 }
 0xca7   : > { %v1633_v54 = vadd.f32 1.0, %v1632_v0  ;;  %v1646_v57 = vmul.f32 %v1645_v55, %v1631_v53 }
 0xca9   : > { %2452 = vrcp.f32 %v1633_v54  ;;  %v1647_v61 = vmul.f32 1.442695, %v1646_v57 }
 0xcab   : > { %2454 = vpow2.f32 %v1647_v61 }
 0xcb3   : > { %v2453_v56 = vpop.eup %2452 }
 0xcb4   : > { %v1636_v58 = vmul.f32 1.0614054, %v2453_v56 }
 0xcb5   : > { %v2455_v7 = vpop.eup %2454 }
 0xcb6   : > { %v1637_v60 = vadd.f32 -1.4531521, %v1636_v58 }
 0xcb8   : > { %v1638_v62 = vmul.f32 %v2453_v56, %v1637_v60 }
 0xcba   : > { %v1639_v63 = vadd.f32 1.4214138, %v1638_v62 }
 0xcbc   : > { %v1640_v2 = vmul.f32 %v2453_v56, %v1639_v63 }
 0xcbe   : > { %v1641_v3 = vadd.f32 -0.28449672, %v1640_v2 }
 0xcc0   : > { %v1642_v4 = vmul.f32 %v2453_v56, %v1641_v3 }
 0xcc2   : > { %v1643_v5 = vadd.f32 0.2548296, %v1642_v4 }
 0xcc4   : > { %v1644_v6 = vmul.f32 %v2453_v56, %v1643_v5 }
 0xcc6   : > { %v1649_v8 = vmul.f32 %v2455_v7, %v1644_v6 }
 0xcc8   : > { %v1650_v9 = vsub.f32 1.0, %v1649_v8 }
 0xcca   : > { %v1651_v11 = vmul.f32 %v1650_v9, %v1630_v1 }
 0xccc   : > { %v1652_v59 = vadd.f32 1.0, %v1651_v11 }
 0xcce   : > { %v1653_v14 = vmul.f32 %v1652_v59, %v1627_v12 }
 0xcd0   : > { %2196 = vmatmul.mubr.f32.vlgmr.msra.gmra.mrb[8].mxu1 %v1653_v14 }
 0xda3   : > { %v1737_v16 = vpop.f32.mrb[8].mxu1 }
 0xda4   : > { %v1738_v17 = vadd.f32 %v1737_v16, %v1670_v15  ;;  %v2197_v18 = vpop.f32.mrb[9].mxu1 }
 0xda6   : > { %v1741_v19 = vadd.f32 %v1738_v17, %v3209_v24  ;;  %v1755_v24 = vld [vmem:[%s3392_s9 + $0x6] ss:$0 sm:$0xff] }
 0xda8   : > { %v1742_v20 = vsel %vm450_vm1, %v1741_v19, 0.0 }
 0xda9   : > { %1743 = vadd.xlane.f32.xlu0 %v1742_v20 }
 0xe36   : > { %v1744_v21 = vpop.xlane.xlu0 %1743 }
 0xe37   : > { %v1745_v22 = vmul.f32 0.03125, %v1744_v21 }
 0xe39   : > { %v1746_v23 = vsub.f32 %v1741_v19, %v1745_v22 }
 0xe3b   : > { %v1747_v32 = vmul.f32 %v1746_v23, %v1746_v23 }
 0xe3d   : > { %v1748_v25 = vsel %vm450_vm1, %v1747_v32, 0.0 }
 0xe3e   : > { %1749 = vadd.xlane.f32.xlu0 %v1748_v25 }
 0xecb   : > { %v1750_v26 = vpop.xlane.xlu0 %1749 }
 0xecc   : > { %v1751_v27 = vmul.f32 0.03125, %v1750_v26 }
 0xece   : > { %v1752_v28 = vadd.f32 1e-05, %v1751_v27 }
 0xed0   : > { %2456 = vrsqrt.f32 %v1752_v28 }
 0xeda   : > { %v2457_v29 = vpop.eup %2456 }
 0xedb   : > { %v1754_v31 = vmul.f32 %v2457_v29, %v1746_v23 }
 0xedd   : > { %v1756_v34 = vmul.f32 %v1755_v24, %v1754_v31 }
 0xedf   : > { %v1758_v13 = vadd.f32 %v1757_v33, %v1756_v34 }
 0xee1   : > { %1759 = vst.msk [vmem:[%s433_s26] sm:$0xff] %vm450_vm1, %v1758_v13 }
 0xee2   : > { %2589 = shalt.err (!%p2586_p11)
}
 0xee3   : > { %s2590_s29 = scalar_lea.hbm %s3288_s6, 128  ;;  %s2594_s22 = scalar_lea.hbm %s3398_s4, 256 }
 0xee4   : > { %p2591_p0 = scmp.ne.s32.totalorder %s3288_s6, %s2590_s29  ;;  %p2595_p8 = scmp.lt.u32.totalorder %s3288_s6, %s3398_s4 }
 0xee5   : > { %p2596_p1 = scmp.lt.u32.totalorder %s2594_s22, %s2590_s29  ;;  %p2598_p4 = scmp.lt.u32.totalorder %s2590_s29, %s3288_s6 }
 0xee6   : > { %p2592_p13 = pnand %p2591_p0, %p3399_p9 }
 0xee7   : > { %p2597_p2 = por %p2596_p1, %p2595_p8 }
 0xee8   : > { %p2593_p10 = pneg %p2592_p13 }
 0xee9   : > { %p2599_p12 = por %p2598_p4, %p2597_p2 }
 0xeeb   : > { %p2600_p6 = pnand %p2599_p12, %p2593_p10 }
 0xeed   : > { %2603 = shalt.err (!%p2600_p6)
}
 0xeee   : > { %2314 = dma.vmem_to_hbm [thread:$0]  (%p3399_p9), %s3290_s21, 128, %s3288_s6, %s1761_s5  }
 0xeef PF: > { %s3400_s1 = sld [smem:[#allocation15_spill]]  ;;  %s3401_s20 = sld [smem:[#allocation20_spill]] }
 0xef0   : > { %s3402_s27 = sld [smem:[#allocation16_spill]] }
 0xef5   : > { %s1786_s26 = sand.u32 1, %s3400_s1   ;;  %p3403_p3 = scmp.ne.s32.totalorder %s3401_s20, 0 }
 0xef6   : > { %p3404_p5 = scmp.ge.s32.totalorder %s3402_s27, 2  ;;  %s1787_s25 = scalar_lea.sflag [#allocation4], %s1786_s26 }
 0xef8   : > { %p2331_p7 = pnand %p3404_p5, %p3403_p3 }
 0xefa   : > { %2633 = dma.done.wait (!%p2331_p7), %s1787_s25, 128  }
 0xefb   : > { %2635 = vsyncadd (!%p2331_p7), %s1787_s25, 4294967168  ;;  %s3405_s12 = sld [smem:[#allocation17_spill]]  ;;  %s3406_s15 = sld [smem:[#allocation18_spill]] }
 0xefc   : > { %s3407_s30 = smov %s2642_s10  ;;  %s3408_s10 = smov %s2646_s11 }
 0xf01   : > { %p26_p11 = scmp.ge.s32.totalorder %s3405_s12, 4   ;;  %s3409_s11 = smov %s3406_s15 }
 0xf03   :  { %28 = sbr.rel (!%p26_p11) target bundleno = 14 (0xe), region = 129 }
 0xf0a   :  { %1792 = vsyncpa [#allocation3], 1 }
 0xf0b   :  { %1794 = vsyncpa [#allocation3 + $0x1], 1 }
 0xf0c   :  { %1795 = vsyncpa [#allocation6], 1 }
 0xf0d   :  { %1797 = vsyncpa [#allocation6 + $0x1], 1 }
 0xf0e   :  { %1798 = vsyncpa [#allocation9], 1 }
 0xf0f   :  { %1799 = vsyncpa [#allocation4], 1 }
 0xf10   :  { %1801 = vsyncpa [#allocation4 + $0x1], 1 }

</bundles_post_ra>
